<compile_context>
chip_gen: v5e
topology: v5e:2x2
jax: 0.10.0
libtpu: 0.0.40
codegen_flags: <defaults>
</compile_context>

<pallas_src>
import functools

import numpy as np
import jax
import jax.numpy as jnp
from jax.experimental import pallas as pl
from jax.experimental.pallas import tpu as pltpu

_DEFAULT = jax.lax.Precision.DEFAULT
_HIGHEST = jax.lax.Precision.HIGHEST


# ----------------------------- reference math helpers -----------------------------
def _squash(s, eps=1e-8):
    sq = jnp.sum(s * s, axis=-1, keepdims=True)
    return (sq / (1.0 + sq)) * s / jnp.sqrt(sq + eps)


def _pearsonr(x, y, eps=1e-8):
    xm = x - jnp.mean(x, axis=-1, keepdims=True)
    ym = y - jnp.mean(y, axis=-1, keepdims=True)
    num = jnp.sum(xm * ym, axis=-1, keepdims=True)
    den = jnp.sqrt(jnp.sum(xm * xm, axis=-1, keepdims=True)) * jnp.sqrt(
        jnp.sum(ym * ym, axis=-1, keepdims=True))
    return num / (den + eps)


def _softmax(x, axis):
    x_max = jnp.max(x, axis=axis, keepdims=True)
    e = jnp.exp(x - x_max)
    return e / jnp.sum(e, axis=axis, keepdims=True)


# --------------------------------- Pallas kernel --------------------------------
def _dtmi_kernel(q_ref, wflat_ref, mc_ref, sm_ref, mmat_ref, mmatT_ref,
                 center_ref, sd_ref, sc_ref, sqm_ref, sit_ref,
                 out_ref, *, num_routing):
    f32 = jnp.float32
    eps = 1e-8
    B = q_ref.shape[0]
    G = sd_ref.shape[1]                       # NC*IC

    Mc = mc_ref[...]                          # (1, F) centered hat_m (batch-invariant)
    sm = sm_ref[...]                          # (1, G) sqrt(sum_DC Mc^2)

    def mm(x, y):
        # single-pass bf16 MXU; the 0/1 / block-constant operands are exact in bf16
        return jnp.dot(x, y, precision=_DEFAULT, preferred_element_type=f32)

    # the one "real" data matmul: keep multi-pass f32 (tiny: (B,IN)x(IN,F))
    Q = jnp.dot(q_ref[...], wflat_ref[...], precision=_HIGHEST,
                preferred_element_type=f32)                            # (B, F)

    def pearson_p(Qcur):
        # Center = I - SD@SD.T/DC fuses mean-subtract (reduce + broadcast + 1/DC scale)
        Qc = mm(Qcur, center_ref[...])                                 # (B, F)
        # stack the two sum-over-DC reductions along sublanes -> ONE matmul
        prods = jnp.concatenate([Mc * Qc, Qc * Qc], axis=0)            # (2B, F)
        sums = mm(prods, sd_ref[...])                                  # (2B, G)
        num, ssq = sums[:B], sums[B:]
        den = sm * jnp.sqrt(ssq)                                       # reference eps placement
        return jnp.tanh(-(num / (den + eps)))                          # (B, G)

    def softmax_nc(a):
        # per-row max shift; logits are bounded by the routing recursion so the
        # per-group vs per-row shift difference cannot underflow the group sums
        e = jnp.exp(a - jnp.max(a, axis=-1, keepdims=True))
        s = mm(e, sc_ref[...])                                         # sum over NC, bcast back
        return e * pl.reciprocal(s, approx=True)

    def squash_h(hv):
        nsq = mm(hv * hv, sqm_ref[...])                                # per-(b,c) ||.||^2, bcast over DC
        return hv * nsq * pl.reciprocal(1.0 + nsq, approx=True) * jax.lax.rsqrt(nsq + eps)

    p = pearson_p(Q)
    a = jnp.zeros((B, G), f32)

    for _ in range(num_routing - 1):           # fully unrolled (tiny trip count)
        d = softmax_nc(a)
        hv = mm(d + p, mmat_ref[...])          # sum_i (d+p)*hat_m  -> (B, NC*DC)
        v = squash_h(hv)
        hm_cos_v = mm(v, mmatT_ref[...])       # <hat_m, v> per (b,c,i) -> (B, G)
        a = a + p * hm_cos_v
        Q = (Q + mm(v, sit_ref[...])) * 0.5    # v broadcast over IC -> (B, F)
        p = pearson_p(Q)

    d = softmax_nc(a)
    out_ref[...] = squash_h(mm(d + p, mmat_ref[...]))                  # (B, NC*DC)


# ----------------------------------- wrapper -------------------------------------
def dynamic_task_memory_induction(mem, q, W, b, num_routing):
    """mem: (in_caps, in_dim); q: (B, in_dim); W: (1,NC,IC,DC,IN); b: (1,NC,IC,DC)."""
    _, NC, IC, DC, IN = W.shape
    B = q.shape[0]
    F, G, H = NC * IC * DC, NC * IC, NC * DC

    W0 = W[0].astype(jnp.float32)                                      # (NC, IC, DC, IN)
    mem = mem.astype(jnp.float32)
    q = q.astype(jnp.float32)

    # ---- batch-invariant precompute (plain XLA glue, hoisted out of the kernel) ----
    hm = (jnp.einsum('cidk,ik->cid', W0, mem, precision=_HIGHEST)
          + b[0].astype(jnp.float32))                                  # (NC, IC, DC)
    mc = hm - jnp.mean(hm, axis=-1, keepdims=True)                     # centered hat_m
    sm = jnp.sqrt(jnp.sum(mc * mc, axis=-1))                           # (NC, IC)
    # block-diagonal (over NC) hat_m matrix: hat_v and <hat_m, v> become single matmuls
    mmat = jnp.einsum('cid,ce->cied', hm,
                      jnp.eye(NC, dtype=jnp.float32)).reshape(G, H)    # (G, H)
    mmatT = mmat.T                                                     # (H, G)
    mc_flat = mc.reshape(1, F)
    sm_flat = sm.reshape(1, G)

    # weights pre-flattened so the kernel does ONE (B,IN)x(IN,F) MXU matmul
    w_flat = jnp.transpose(W0, (3, 0, 1, 2)).reshape(IN, F)            # (IN, F)

    # ---- constant segment / broadcast matrices for flat layout j = (c*IC + i)*DC + d ----
    j = np.arange(F)
    c = j // (IC * DC)
    i = (j % (IC * DC)) // DC
    d = j % DC
    g = c * IC + i                      # group (c, i)
    h = c * DC + d                      # output slot (c, d)
    SD = (g[:, None] == np.arange(G)[None, :]).astype(np.float32)      # (F, G) sum over DC
    Center = np.eye(F, dtype=np.float32) - SD @ SD.T / DC              # fused centering (+1/DC)
    gi = np.arange(G)
    SC = ((gi % IC)[:, None] == (gi % IC)[None, :]).astype(np.float32)   # (G, G) sum over NC
    hh = np.arange(H)
    SQ = ((hh // DC)[:, None] == (hh // DC)[None, :]).astype(np.float32)  # (H, H) sum+bcast over DC
    SIt = (hh[:, None] == h[None, :]).astype(np.float32)               # (H, F) broadcast over IC

    consts = (jnp.asarray(Center), jnp.asarray(SD), jnp.asarray(SC),
              jnp.asarray(SQ), jnp.asarray(SIt))

    kernel = functools.partial(_dtmi_kernel, num_routing=num_routing)
    cost = pl.CostEstimate(
        flops=int(6 * B * F * F * num_routing),
        transcendentals=int(4 * B * G * num_routing),
        bytes_accessed=int(4 * (F * F + H * F + F * G + 2 * G * H + H * H + G * G
                                + IN * F + B * (IN + H) + F + G)))

    # Everything fits comfortably in VMEM (<0.5 MiB total): whole-array blocks, no grid.
    return pl.pallas_call(
        kernel,
        out_shape=jax.ShapeDtypeStruct((B, H), jnp.float32),
        in_specs=[pl.BlockSpec(memory_space=pltpu.MemorySpace.VMEM)] * 11,
        out_specs=pl.BlockSpec(memory_space=pltpu.MemorySpace.VMEM),
        cost_estimate=cost,
    )(q, w_flat, mc_flat, sm_flat, mmat, mmatT, *consts)


# ----------------------------- pure-JAX reference --------------------------------
def _reference(mem, q, W, b, num_routing):
    B = q.shape[0]
    _, NC, IC, DC, IN = W.shape
    W0 = W[0]
    hat_m_ = jnp.einsum('cidk,ik->cid', W0, mem, precision=_HIGHEST)
    hat_m_ij = jnp.broadcast_to((hat_m_ + b[0])[None], (B, NC, IC, DC))
    tmp_hat_m = hat_m_ij
    tmp_hat_q = jnp.einsum('cidk,bk->bcid', W0, q, precision=_HIGHEST)
    a = jnp.zeros((B, NC, IC, 1), jnp.float32)
    p_ij = jnp.tanh(-_pearsonr(tmp_hat_m, tmp_hat_q))
    for _ in range(num_routing - 1):
        d = _softmax(a, axis=1)
        hat_v = jnp.sum((d + p_ij) * tmp_hat_m, axis=2)
        v = _squash(hat_v)
        hat_m_cos_v = jnp.sum(tmp_hat_m * v[:, :, None, :], axis=-1, keepdims=True)
        a = a + p_ij * hat_m_cos_v
        tmp_hat_q = (tmp_hat_q + v[:, :, None, :]) / 2.0
        p_ij = jnp.tanh(-_pearsonr(tmp_hat_m, tmp_hat_q))
    d = _softmax(a, axis=1)
    hat_v = jnp.sum((d + p_ij) * hat_m_ij, axis=2)
    return _squash(hat_v).reshape(B, NC * DC)


# ------------------------------------- main ---------------------------------------
if __name__ == "__main__":
    # small shapes consistent with the module
    in_caps, in_dim = 4, 32
    num_caps, dim_caps = 4, 16
    num_routing = 3
    n_class, k_samples = 2, 4
    B = n_class * k_samples          # q.shape[0]

    key = jax.random.PRNGKey(0)
    kw, km, kq = jax.random.split(key, 3)

    # deterministic parameter init (mirrors __init__: W_share expanded over in_caps, b = ones)
    W_share = 0.01 * jax.random.normal(kw, (1, num_caps, 1, dim_caps, in_dim), jnp.float32)
    W = jnp.broadcast_to(W_share, (1, num_caps, in_caps, dim_caps, in_dim))
    b = jnp.ones((1, num_caps, in_caps, dim_caps), jnp.float32)

    mem = jax.random.normal(km, (in_caps, in_dim), jnp.float32)   # memory m (N_mem == in_caps)
    q = jax.random.normal(kq, (B, in_dim), jnp.float32)

    out = dynamic_task_memory_induction(mem, q, W, b, num_routing)
    out = jax.block_until_ready(out)

    ref = _reference(mem, q, W, b, num_routing)
    assert out.shape == (B, num_caps * dim_caps)
    assert bool(jnp.all(jnp.isfinite(out)))
    # Routing matmuls run single-pass bf16 on the MXU (precision=DEFAULT) and the kernel
    # uses approx-EUP reciprocals, so compare with a slightly widened tolerance.
    assert bool(jnp.allclose(out, ref, rtol=2e-2, atol=2e-2))
    print("KERNEL_OK")
</pallas_src>

<mosaic_0001>
module attributes {stable_mosaic.version = 11 : i64} {
  func.func @_dtmi_kernel(%arg0: memref<8x32xf32, #tpu.memory_space<vmem>>, %arg1: memref<32x256xf32, #tpu.memory_space<vmem>>, %arg2: memref<1x256xf32, #tpu.memory_space<vmem>>, %arg3: memref<1x16xf32, #tpu.memory_space<vmem>>, %arg4: memref<16x64xf32, #tpu.memory_space<vmem>>, %arg5: memref<64x16xf32, #tpu.memory_space<vmem>>, %arg6: memref<256x256xf32, #tpu.memory_space<vmem>>, %arg7: memref<256x16xf32, #tpu.memory_space<vmem>>, %arg8: memref<16x16xf32, #tpu.memory_space<vmem>>, %arg9: memref<64x64xf32, #tpu.memory_space<vmem>>, %arg10: memref<64x256xf32, #tpu.memory_space<vmem>>, %arg11: memref<8x64xf32, #tpu.memory_space<vmem>>) attributes {dimension_semantics = [], scalar_prefetch = 0 : i64, scratch_operands = 0 : i64, tpu.core_type = #tpu.core_type<tc>} {
    %c0 = arith.constant 0 : index
    %c0_0 = arith.constant 0 : index
    %0 = vector.load %arg2[%c0, %c0_0] : memref<1x256xf32, #tpu.memory_space<vmem>>, vector<1x256xf32>
    %c0_1 = arith.constant 0 : index
    %c0_2 = arith.constant 0 : index
    %1 = vector.load %arg3[%c0_1, %c0_2] : memref<1x16xf32, #tpu.memory_space<vmem>>, vector<1x16xf32>
    %c0_3 = arith.constant 0 : index
    %c0_4 = arith.constant 0 : index
    %2 = vector.load %arg0[%c0_3, %c0_4] : memref<8x32xf32, #tpu.memory_space<vmem>>, vector<8x32xf32>
    %c0_5 = arith.constant 0 : index
    %c0_6 = arith.constant 0 : index
    %3 = vector.load %arg1[%c0_5, %c0_6] : memref<32x256xf32, #tpu.memory_space<vmem>>, vector<32x256xf32>
    %cst = arith.constant dense<0.000000e+00> : vector<8x256xf32>
    %4 = tpu.matmul %2, %3, %cst {dimension_numbers = #tpu.dot_dimension_numbers<[1], [0], [0], [1], [0, 0, 1, 1], [], []>, precision = #tpu.contract_precision<fp32>} : vector<8x32xf32>, vector<32x256xf32>, vector<8x256xf32> -> vector<8x256xf32>
    %c0_7 = arith.constant 0 : index
    %c0_8 = arith.constant 0 : index
    %5 = vector.load %arg6[%c0_7, %c0_8] : memref<256x256xf32, #tpu.memory_space<vmem>>, vector<256x256xf32>
    %cst_9 = arith.constant dense<0.000000e+00> : vector<8x256xf32>
    %6 = tpu.matmul %4, %5, %cst_9 {dimension_numbers = #tpu.dot_dimension_numbers<[1], [0], [0], [1], [0, 0, 1, 1], [], []>} : vector<8x256xf32>, vector<256x256xf32>, vector<8x256xf32> -> vector<8x256xf32>
    %7 = vector.broadcast %0 : vector<1x256xf32> to vector<8x256xf32>
    %8 = arith.mulf %7, %6 : vector<8x256xf32>
    %9 = arith.mulf %6, %6 : vector<8x256xf32>
    %10 = tpu.concatenate %8, %9 in 0 : vector<8x256xf32>, vector<8x256xf32> -> vector<16x256xf32>
    %c0_10 = arith.constant 0 : index
    %c0_11 = arith.constant 0 : index
    %11 = vector.load %arg7[%c0_10, %c0_11] : memref<256x16xf32, #tpu.memory_space<vmem>>, vector<256x16xf32>
    %cst_12 = arith.constant dense<0.000000e+00> : vector<16x16xf32>
    %12 = tpu.matmul %10, %11, %cst_12 {dimension_numbers = #tpu.dot_dimension_numbers<[1], [0], [0], [1], [0, 0, 1, 1], [], []>} : vector<16x256xf32>, vector<256x16xf32>, vector<16x16xf32> -> vector<16x16xf32>
    %13 = vector.extract_strided_slice %12 {offsets = [0, 0], sizes = [8, 16], strides = [1, 1]} : vector<16x16xf32> to vector<8x16xf32>
    %14 = vector.extract_strided_slice %12 {offsets = [8, 0], sizes = [8, 16], strides = [1, 1]} : vector<16x16xf32> to vector<8x16xf32>
    %15 = math.sqrt %14 : vector<8x16xf32>
    %16 = vector.broadcast %1 : vector<1x16xf32> to vector<8x16xf32>
    %17 = arith.mulf %16, %15 : vector<8x16xf32>
    %cst_13 = arith.constant 9.99999993E-9 : f32
    %18 = vector.broadcast %cst_13 : f32 to vector<8x16xf32>
    %19 = arith.addf %17, %18 : vector<8x16xf32>
    %20 = arith.divf %13, %19 : vector<8x16xf32>
    %cst_14 = arith.constant 0.000000e+00 : f32
    %21 = vector.broadcast %cst_14 : f32 to vector<8x16xf32>
    %22 = arith.subf %21, %20 : vector<8x16xf32>
    %23 = math.tanh %22 : vector<8x16xf32>
    %cst_15 = arith.constant 0.000000e+00 : f32
    %24 = vector.broadcast %cst_15 : f32 to vector<8x16xf32>
    %cst_16 = arith.constant dense<0xFF800000> : vector<8xf32>
    %25 = vector.multi_reduction <maximumf>, %24, %cst_16 [1] : vector<8x16xf32> to vector<8xf32>
    %26 = vector.shape_cast %25 : vector<8xf32> to vector<8x1xf32>
    %27 = vector.broadcast %26 : vector<8x1xf32> to vector<8x16xf32>
    %28 = arith.subf %24, %27 : vector<8x16xf32>
    %29 = math.exp %28 : vector<8x16xf32>
    %c0_17 = arith.constant 0 : index
    %c0_18 = arith.constant 0 : index
    %30 = vector.load %arg8[%c0_17, %c0_18] : memref<16x16xf32, #tpu.memory_space<vmem>>, vector<16x16xf32>
    %cst_19 = arith.constant dense<0.000000e+00> : vector<8x16xf32>
    %31 = tpu.matmul %29, %30, %cst_19 {dimension_numbers = #tpu.dot_dimension_numbers<[1], [0], [0], [1], [0, 0, 1, 1], [], []>} : vector<8x16xf32>, vector<16x16xf32>, vector<8x16xf32> -> vector<8x16xf32>
    %32 = tpu.reciprocal %31 {approx = true} : vector<8x16xf32> -> vector<8x16xf32>
    %33 = arith.mulf %29, %32 : vector<8x16xf32>
    %34 = arith.addf %33, %23 : vector<8x16xf32>
    %c0_20 = arith.constant 0 : index
    %c0_21 = arith.constant 0 : index
    %35 = vector.load %arg4[%c0_20, %c0_21] : memref<16x64xf32, #tpu.memory_space<vmem>>, vector<16x64xf32>
    %cst_22 = arith.constant dense<0.000000e+00> : vector<8x64xf32>
    %36 = tpu.matmul %34, %35, %cst_22 {dimension_numbers = #tpu.dot_dimension_numbers<[1], [0], [0], [1], [0, 0, 1, 1], [], []>} : vector<8x16xf32>, vector<16x64xf32>, vector<8x64xf32> -> vector<8x64xf32>
    %37 = arith.mulf %36, %36 : vector<8x64xf32>
    %c0_23 = arith.constant 0 : index
    %c0_24 = arith.constant 0 : index
    %38 = vector.load %arg9[%c0_23, %c0_24] : memref<64x64xf32, #tpu.memory_space<vmem>>, vector<64x64xf32>
    %cst_25 = arith.constant dense<0.000000e+00> : vector<8x64xf32>
    %39 = tpu.matmul %37, %38, %cst_25 {dimension_numbers = #tpu.dot_dimension_numbers<[1], [0], [0], [1], [0, 0, 1, 1], [], []>} : vector<8x64xf32>, vector<64x64xf32>, vector<8x64xf32> -> vector<8x64xf32>
    %40 = arith.mulf %36, %39 : vector<8x64xf32>
    %cst_26 = arith.constant 1.000000e+00 : f32
    %41 = vector.broadcast %cst_26 : f32 to vector<8x64xf32>
    %42 = arith.addf %41, %39 : vector<8x64xf32>
    %43 = tpu.reciprocal %42 {approx = true} : vector<8x64xf32> -> vector<8x64xf32>
    %44 = arith.mulf %40, %43 : vector<8x64xf32>
    %cst_27 = arith.constant 9.99999993E-9 : f32
    %45 = vector.broadcast %cst_27 : f32 to vector<8x64xf32>
    %46 = arith.addf %39, %45 : vector<8x64xf32>
    %47 = math.rsqrt %46 : vector<8x64xf32>
    %48 = arith.mulf %44, %47 : vector<8x64xf32>
    %c0_28 = arith.constant 0 : index
    %c0_29 = arith.constant 0 : index
    %49 = vector.load %arg5[%c0_28, %c0_29] : memref<64x16xf32, #tpu.memory_space<vmem>>, vector<64x16xf32>
    %cst_30 = arith.constant dense<0.000000e+00> : vector<8x16xf32>
    %50 = tpu.matmul %48, %49, %cst_30 {dimension_numbers = #tpu.dot_dimension_numbers<[1], [0], [0], [1], [0, 0, 1, 1], [], []>} : vector<8x64xf32>, vector<64x16xf32>, vector<8x16xf32> -> vector<8x16xf32>
    %51 = arith.mulf %23, %50 : vector<8x16xf32>
    %52 = arith.addf %24, %51 : vector<8x16xf32>
    %c0_31 = arith.constant 0 : index
    %c0_32 = arith.constant 0 : index
    %53 = vector.load %arg10[%c0_31, %c0_32] : memref<64x256xf32, #tpu.memory_space<vmem>>, vector<64x256xf32>
    %cst_33 = arith.constant dense<0.000000e+00> : vector<8x256xf32>
    %54 = tpu.matmul %48, %53, %cst_33 {dimension_numbers = #tpu.dot_dimension_numbers<[1], [0], [0], [1], [0, 0, 1, 1], [], []>} : vector<8x64xf32>, vector<64x256xf32>, vector<8x256xf32> -> vector<8x256xf32>
    %55 = arith.addf %4, %54 : vector<8x256xf32>
    %cst_34 = arith.constant 5.000000e-01 : f32
    %56 = vector.broadcast %cst_34 : f32 to vector<8x256xf32>
    %57 = arith.mulf %55, %56 : vector<8x256xf32>
    %c0_35 = arith.constant 0 : index
    %c0_36 = arith.constant 0 : index
    %58 = vector.load %arg6[%c0_35, %c0_36] : memref<256x256xf32, #tpu.memory_space<vmem>>, vector<256x256xf32>
    %cst_37 = arith.constant dense<0.000000e+00> : vector<8x256xf32>
    %59 = tpu.matmul %57, %58, %cst_37 {dimension_numbers = #tpu.dot_dimension_numbers<[1], [0], [0], [1], [0, 0, 1, 1], [], []>} : vector<8x256xf32>, vector<256x256xf32>, vector<8x256xf32> -> vector<8x256xf32>
    %60 = vector.broadcast %0 : vector<1x256xf32> to vector<8x256xf32>
    %61 = arith.mulf %60, %59 : vector<8x256xf32>
    %62 = arith.mulf %59, %59 : vector<8x256xf32>
    %63 = tpu.concatenate %61, %62 in 0 : vector<8x256xf32>, vector<8x256xf32> -> vector<16x256xf32>
    %c0_38 = arith.constant 0 : index
    %c0_39 = arith.constant 0 : index
    %64 = vector.load %arg7[%c0_38, %c0_39] : memref<256x16xf32, #tpu.memory_space<vmem>>, vector<256x16xf32>
    %cst_40 = arith.constant dense<0.000000e+00> : vector<16x16xf32>
    %65 = tpu.matmul %63, %64, %cst_40 {dimension_numbers = #tpu.dot_dimension_numbers<[1], [0], [0], [1], [0, 0, 1, 1], [], []>} : vector<16x256xf32>, vector<256x16xf32>, vector<16x16xf32> -> vector<16x16xf32>
    %66 = vector.extract_strided_slice %65 {offsets = [0, 0], sizes = [8, 16], strides = [1, 1]} : vector<16x16xf32> to vector<8x16xf32>
    %67 = vector.extract_strided_slice %65 {offsets = [8, 0], sizes = [8, 16], strides = [1, 1]} : vector<16x16xf32> to vector<8x16xf32>
    %68 = math.sqrt %67 : vector<8x16xf32>
    %69 = vector.broadcast %1 : vector<1x16xf32> to vector<8x16xf32>
    %70 = arith.mulf %69, %68 : vector<8x16xf32>
    %cst_41 = arith.constant 9.99999993E-9 : f32
    %71 = vector.broadcast %cst_41 : f32 to vector<8x16xf32>
    %72 = arith.addf %70, %71 : vector<8x16xf32>
    %73 = arith.divf %66, %72 : vector<8x16xf32>
    %cst_42 = arith.constant 0.000000e+00 : f32
    %74 = vector.broadcast %cst_42 : f32 to vector<8x16xf32>
    %75 = arith.subf %74, %73 : vector<8x16xf32>
    %76 = math.tanh %75 : vector<8x16xf32>
    %cst_43 = arith.constant dense<0xFF800000> : vector<8xf32>
    %77 = vector.multi_reduction <maximumf>, %52, %cst_43 [1] : vector<8x16xf32> to vector<8xf32>
    %78 = vector.shape_cast %77 : vector<8xf32> to vector<8x1xf32>
    %79 = vector.broadcast %78 : vector<8x1xf32> to vector<8x16xf32>
    %80 = arith.subf %52, %79 : vector<8x16xf32>
    %81 = math.exp %80 : vector<8x16xf32>
    %c0_44 = arith.constant 0 : index
    %c0_45 = arith.constant 0 : index
    %82 = vector.load %arg8[%c0_44, %c0_45] : memref<16x16xf32, #tpu.memory_space<vmem>>, vector<16x16xf32>
    %cst_46 = arith.constant dense<0.000000e+00> : vector<8x16xf32>
    %83 = tpu.matmul %81, %82, %cst_46 {dimension_numbers = #tpu.dot_dimension_numbers<[1], [0], [0], [1], [0, 0, 1, 1], [], []>} : vector<8x16xf32>, vector<16x16xf32>, vector<8x16xf32> -> vector<8x16xf32>
    %84 = tpu.reciprocal %83 {approx = true} : vector<8x16xf32> -> vector<8x16xf32>
    %85 = arith.mulf %81, %84 : vector<8x16xf32>
    %86 = arith.addf %85, %76 : vector<8x16xf32>
    %c0_47 = arith.constant 0 : index
    %c0_48 = arith.constant 0 : index
    %87 = vector.load %arg4[%c0_47, %c0_48] : memref<16x64xf32, #tpu.memory_space<vmem>>, vector<16x64xf32>
    %cst_49 = arith.constant dense<0.000000e+00> : vector<8x64xf32>
    %88 = tpu.matmul %86, %87, %cst_49 {dimension_numbers = #tpu.dot_dimension_numbers<[1], [0], [0], [1], [0, 0, 1, 1], [], []>} : vector<8x16xf32>, vector<16x64xf32>, vector<8x64xf32> -> vector<8x64xf32>
    %89 = arith.mulf %88, %88 : vector<8x64xf32>
    %c0_50 = arith.constant 0 : index
    %c0_51 = arith.constant 0 : index
    %90 = vector.load %arg9[%c0_50, %c0_51] : memref<64x64xf32, #tpu.memory_space<vmem>>, vector<64x64xf32>
    %cst_52 = arith.constant dense<0.000000e+00> : vector<8x64xf32>
    %91 = tpu.matmul %89, %90, %cst_52 {dimension_numbers = #tpu.dot_dimension_numbers<[1], [0], [0], [1], [0, 0, 1, 1], [], []>} : vector<8x64xf32>, vector<64x64xf32>, vector<8x64xf32> -> vector<8x64xf32>
    %92 = arith.mulf %88, %91 : vector<8x64xf32>
    %cst_53 = arith.constant 1.000000e+00 : f32
    %93 = vector.broadcast %cst_53 : f32 to vector<8x64xf32>
    %94 = arith.addf %93, %91 : vector<8x64xf32>
    %95 = tpu.reciprocal %94 {approx = true} : vector<8x64xf32> -> vector<8x64xf32>
    %96 = arith.mulf %92, %95 : vector<8x64xf32>
    %cst_54 = arith.constant 9.99999993E-9 : f32
    %97 = vector.broadcast %cst_54 : f32 to vector<8x64xf32>
    %98 = arith.addf %91, %97 : vector<8x64xf32>
    %99 = math.rsqrt %98 : vector<8x64xf32>
    %100 = arith.mulf %96, %99 : vector<8x64xf32>
    %c0_55 = arith.constant 0 : index
    %c0_56 = arith.constant 0 : index
    %101 = vector.load %arg5[%c0_55, %c0_56] : memref<64x16xf32, #tpu.memory_space<vmem>>, vector<64x16xf32>
    %cst_57 = arith.constant dense<0.000000e+00> : vector<8x16xf32>
    %102 = tpu.matmul %100, %101, %cst_57 {dimension_numbers = #tpu.dot_dimension_numbers<[1], [0], [0], [1], [0, 0, 1, 1], [], []>} : vector<8x64xf32>, vector<64x16xf32>, vector<8x16xf32> -> vector<8x16xf32>
    %103 = arith.mulf %76, %102 : vector<8x16xf32>
    %104 = arith.addf %52, %103 : vector<8x16xf32>
    %c0_58 = arith.constant 0 : index
    %c0_59 = arith.constant 0 : index
    %105 = vector.load %arg10[%c0_58, %c0_59] : memref<64x256xf32, #tpu.memory_space<vmem>>, vector<64x256xf32>
    %cst_60 = arith.constant dense<0.000000e+00> : vector<8x256xf32>
    %106 = tpu.matmul %100, %105, %cst_60 {dimension_numbers = #tpu.dot_dimension_numbers<[1], [0], [0], [1], [0, 0, 1, 1], [], []>} : vector<8x64xf32>, vector<64x256xf32>, vector<8x256xf32> -> vector<8x256xf32>
    %107 = arith.addf %57, %106 : vector<8x256xf32>
    %cst_61 = arith.constant 5.000000e-01 : f32
    %108 = vector.broadcast %cst_61 : f32 to vector<8x256xf32>
    %109 = arith.mulf %107, %108 : vector<8x256xf32>
    %c0_62 = arith.constant 0 : index
    %c0_63 = arith.constant 0 : index
    %110 = vector.load %arg6[%c0_62, %c0_63] : memref<256x256xf32, #tpu.memory_space<vmem>>, vector<256x256xf32>
    %cst_64 = arith.constant dense<0.000000e+00> : vector<8x256xf32>
    %111 = tpu.matmul %109, %110, %cst_64 {dimension_numbers = #tpu.dot_dimension_numbers<[1], [0], [0], [1], [0, 0, 1, 1], [], []>} : vector<8x256xf32>, vector<256x256xf32>, vector<8x256xf32> -> vector<8x256xf32>
    %112 = vector.broadcast %0 : vector<1x256xf32> to vector<8x256xf32>
    %113 = arith.mulf %112, %111 : vector<8x256xf32>
    %114 = arith.mulf %111, %111 : vector<8x256xf32>
    %115 = tpu.concatenate %113, %114 in 0 : vector<8x256xf32>, vector<8x256xf32> -> vector<16x256xf32>
    %c0_65 = arith.constant 0 : index
    %c0_66 = arith.constant 0 : index
    %116 = vector.load %arg7[%c0_65, %c0_66] : memref<256x16xf32, #tpu.memory_space<vmem>>, vector<256x16xf32>
    %cst_67 = arith.constant dense<0.000000e+00> : vector<16x16xf32>
    %117 = tpu.matmul %115, %116, %cst_67 {dimension_numbers = #tpu.dot_dimension_numbers<[1], [0], [0], [1], [0, 0, 1, 1], [], []>} : vector<16x256xf32>, vector<256x16xf32>, vector<16x16xf32> -> vector<16x16xf32>
    %118 = vector.extract_strided_slice %117 {offsets = [0, 0], sizes = [8, 16], strides = [1, 1]} : vector<16x16xf32> to vector<8x16xf32>
    %119 = vector.extract_strided_slice %117 {offsets = [8, 0], sizes = [8, 16], strides = [1, 1]} : vector<16x16xf32> to vector<8x16xf32>
    %120 = math.sqrt %119 : vector<8x16xf32>
    %121 = vector.broadcast %1 : vector<1x16xf32> to vector<8x16xf32>
    %122 = arith.mulf %121, %120 : vector<8x16xf32>
    %cst_68 = arith.constant 9.99999993E-9 : f32
    %123 = vector.broadcast %cst_68 : f32 to vector<8x16xf32>
    %124 = arith.addf %122, %123 : vector<8x16xf32>
    %125 = arith.divf %118, %124 : vector<8x16xf32>
    %cst_69 = arith.constant 0.000000e+00 : f32
    %126 = vector.broadcast %cst_69 : f32 to vector<8x16xf32>
    %127 = arith.subf %126, %125 : vector<8x16xf32>
    %128 = math.tanh %127 : vector<8x16xf32>
    %cst_70 = arith.constant dense<0xFF800000> : vector<8xf32>
    %129 = vector.multi_reduction <maximumf>, %104, %cst_70 [1] : vector<8x16xf32> to vector<8xf32>
    %130 = vector.shape_cast %129 : vector<8xf32> to vector<8x1xf32>
    %131 = vector.broadcast %130 : vector<8x1xf32> to vector<8x16xf32>
    %132 = arith.subf %104, %131 : vector<8x16xf32>
    %133 = math.exp %132 : vector<8x16xf32>
    %c0_71 = arith.constant 0 : index
    %c0_72 = arith.constant 0 : index
    %134 = vector.load %arg8[%c0_71, %c0_72] : memref<16x16xf32, #tpu.memory_space<vmem>>, vector<16x16xf32>
    %cst_73 = arith.constant dense<0.000000e+00> : vector<8x16xf32>
    %135 = tpu.matmul %133, %134, %cst_73 {dimension_numbers = #tpu.dot_dimension_numbers<[1], [0], [0], [1], [0, 0, 1, 1], [], []>} : vector<8x16xf32>, vector<16x16xf32>, vector<8x16xf32> -> vector<8x16xf32>
    %136 = tpu.reciprocal %135 {approx = true} : vector<8x16xf32> -> vector<8x16xf32>
    %137 = arith.mulf %133, %136 : vector<8x16xf32>
    %138 = arith.addf %137, %128 : vector<8x16xf32>
    %c0_74 = arith.constant 0 : index
    %c0_75 = arith.constant 0 : index
    %139 = vector.load %arg4[%c0_74, %c0_75] : memref<16x64xf32, #tpu.memory_space<vmem>>, vector<16x64xf32>
    %cst_76 = arith.constant dense<0.000000e+00> : vector<8x64xf32>
    %140 = tpu.matmul %138, %139, %cst_76 {dimension_numbers = #tpu.dot_dimension_numbers<[1], [0], [0], [1], [0, 0, 1, 1], [], []>} : vector<8x16xf32>, vector<16x64xf32>, vector<8x64xf32> -> vector<8x64xf32>
    %141 = arith.mulf %140, %140 : vector<8x64xf32>
    %c0_77 = arith.constant 0 : index
    %c0_78 = arith.constant 0 : index
    %142 = vector.load %arg9[%c0_77, %c0_78] : memref<64x64xf32, #tpu.memory_space<vmem>>, vector<64x64xf32>
    %cst_79 = arith.constant dense<0.000000e+00> : vector<8x64xf32>
    %143 = tpu.matmul %141, %142, %cst_79 {dimension_numbers = #tpu.dot_dimension_numbers<[1], [0], [0], [1], [0, 0, 1, 1], [], []>} : vector<8x64xf32>, vector<64x64xf32>, vector<8x64xf32> -> vector<8x64xf32>
    %144 = arith.mulf %140, %143 : vector<8x64xf32>
    %cst_80 = arith.constant 1.000000e+00 : f32
    %145 = vector.broadcast %cst_80 : f32 to vector<8x64xf32>
    %146 = arith.addf %145, %143 : vector<8x64xf32>
    %147 = tpu.reciprocal %146 {approx = true} : vector<8x64xf32> -> vector<8x64xf32>
    %148 = arith.mulf %144, %147 : vector<8x64xf32>
    %cst_81 = arith.constant 9.99999993E-9 : f32
    %149 = vector.broadcast %cst_81 : f32 to vector<8x64xf32>
    %150 = arith.addf %143, %149 : vector<8x64xf32>
    %151 = math.rsqrt %150 : vector<8x64xf32>
    %152 = arith.mulf %148, %151 : vector<8x64xf32>
    %c0_82 = arith.constant 0 : index
    %c0_83 = arith.constant 0 : index
    %153 = vector.load %arg11[%c0_82, %c0_83] : memref<8x64xf32, #tpu.memory_space<vmem>>, vector<8x64xf32>
    tpu.vector_store %arg11[%c0_82, %c0_83], %152 {strides = array<i32>} : memref<8x64xf32, #tpu.memory_space<vmem>>, vector<8x64xf32>,
    return
  }
}

</mosaic_0001>

<bundles_post_ra>
// kernel: tpu_custom_call.1
= control target key start
LH: loop header
LB: loop body
LE: loop exit
PB: predicated region body
PF: predicated region fallthrough
CT: control target
= control target key end

     0   :  { %16 = vsyncpa [#allocation3], 0  ;;  %s2762_s0 = inlined_call_operand.vmem [shape: f32[8,32], index: 0, kind: input, shape index: {}]   ;;  %s2763_s1 = inlined_call_operand.vmem [shape: f32[32,256], index: 1, kind: input, shape index: {}]   ;;  %s2764_s2 = inlined_call_operand.vmem [shape: f32[1,256], index: 2, kind: input, shape index: {}]   ;;  %s2765_s3 = inlined_call_operand.vmem [shape: f32[1,16], index: 3, kind: input, shape index: {}]   ;;  %s2766_s4 = inlined_call_operand.vmem [shape: f32[16,64], index: 4, kind: input, shape index: {}]   ;;  %s2767_s5 = inlined_call_operand.vmem [shape: f32[64,16], index: 5, kind: input, shape index: {}]   ;;  %s2768_s6 = inlined_call_operand.hbm [shape: f32[256,256], index: 6, kind: input, shape index: {}]   ;;  %s2769_s7 = inlined_call_operand.vmem [shape: f32[256,16], index: 7, kind: input, shape index: {}]   ;;  %s2770_s8 = inlined_call_operand.vmem [shape: f32[16,16], index: 8, kind: input, shape index: {}]   ;;  %s2771_s9 = inlined_call_operand.vmem [shape: f32[64,64], index: 9, kind: input, shape index: {}]   ;;  %s2772_s10 = inlined_call_operand.vmem [shape: f32[64,256], index: 10, kind: input, shape index: {}]   ;;  %s2773_s11 = inlined_call_operand.hbm [shape: f32[8,64], index: 11, kind: output, shape index: {}]  }
   0x1   :  { %17 = vsyncpa [#allocation4], 0  ;;  %s34_s19 = sshll.u32 %s2768_s6, 4  ;;  %s1673_s20 = smov [#allocation2]   ;;  %s35_s19 = int_to_ptr.hbm [resolvable:$true] %s34_s19 }
   0x2   :  { %s36_s21 = sshll.u32 %s1673_s20, 4  ;;  %s1674_s22 = smov 256   ;;  %s37_s21 = int_to_ptr.vmem [resolvable:$true] %s36_s21 }
   0x3   :  { %s1675_s23 = smov 16  }
   0x4   :  { %42 = dma.hbm_to_vmem [thread:$0]  %s35_s19, 8192, %s37_s21, [#allocation3], %s1674_s22, %s1674_s22, %s1675_s23  }
   0x5   :  { %1669 = dma.done.wait [#allocation3], 8192  }
   0x6   :  { %1670 = vsyncadd [#allocation3], 4294959104  ;;  %vm66_vm0 = vcmask 261120   ;;  %v64_v0 = vld [vmem:[%s2763_s1 + $0x30] sm:$0xff]  ;;  %v62_v1 = vld [vmem:[%s2763_s1 + $0x20] sm:$0xff]  ;;  %vm707_vm1 = vcmask 130048  }
   0x7   :  { %v60_v2 = vld [vmem:[%s2763_s1 + $0x10] sm:$0xff]  ;;  %v1750_v3 = vand.u32 4294901760, %v64_v0  ;;  %v1752_v4 = vand.u32 4294901760, %v62_v1  ;;  %v58_v6 = vld [vmem:[%s2763_s1] sm:$0xff]  ;;  %v65_v8 = vld [vmem:[%s2763_s1 + $0x38] sm:$0xff]  ;;  %vm767_vm8 = vcmask 523264  }
   0x8   :  { %v1754_v5 = vand.u32 4294901760, %v60_v2  ;;  %v57_v7 = vld [vmem:[%s2762_s0] sm:$0xff]  ;;  %v1765_v9 = vand.u32 4294901760, %v58_v6  ;;  %v1767_v11 = vand.u32 4294901760, %v65_v8  ;;  %v63_v12 = vld [vmem:[%s2763_s1 + $0x28] sm:$0xff]  ;;  %v61_v13 = vld [vmem:[%s2763_s1 + $0x18] sm:$0xff] }
   0x9   :  { %v68_v10 = vsel %vm66_vm0, %v57_v7, 0  ;;  %83 = vmatpush.msra.mxu1 %v1750_v3  ;;  %v112_v14 = vsub.f32 %v64_v0, %v1750_v3  ;;  %183 = vmatpush.msra.mxu3 %v1750_v3  ;;  %v118_v15 = vsub.f32 %v62_v1, %v1752_v4  ;;  %v1786_v20 = vand.u32 4294901760, %v63_v12  ;;  %v59_v37 = vld [vmem:[%s2763_s1 + $0x8] sm:$0xff]  ;;  %v1840_v55 = vld [vmem:[#allocation2 + $0xf0] sm:$0xff]  ;;  %v1844_v56 = vld [vmem:[#allocation2 + $0xf8] sm:$0xff] }
   0xa   :  { %v1779_v16 = vand.u32 4294901760, %v68_v10  ;;  %v124_v17 = vsub.f32 %v60_v2, %v1754_v5  ;;  %v130_v18 = vsub.f32 %v58_v6, %v1765_v9  ;;  %v1784_v19 = vsub.f32 %v65_v8, %v1767_v11  ;;  %2842 = vst [vmem:[#allocation8_spill] sm:$0xff] %v1844_v56  ;;  %v1847_v57 = vld [vmem:[#allocation2 + $0xe0] sm:$0xff]  ;;  %v1851_v58 = vld [vmem:[#allocation2 + $0xe8] sm:$0xff]  ;;  %v1854_v59 = vld [vmem:[#allocation2 + $0xd0] sm:$0xff] }
   0xb   :  { %v1788_v21 = vand.u32 4294901760, %v61_v13  ;;  %85 = vmatpush.msra.mxu1 %v1752_v4  ;;  %154 = vmatpush.msra.mxu2 %v112_v14  ;;  %v113_v23 = vand.u32 4294901760, %v112_v14  ;;  %v119_v24 = vand.u32 4294901760, %v118_v15  ;;  %v1797_v28 = vsub.f32 %v63_v12, %v1786_v20  ;;  %2843 = vst [vmem:[#allocation9_spill] sm:$0xff] %v1851_v58  ;;  %v1857_v60 = vld [vmem:[#allocation2 + $0xd8] sm:$0xff]  ;;  %v1860_v61 = vld [vmem:[#allocation2 + $0xc0] sm:$0xff] }
   0xc   :  { %v1792_v22 = vsub.f32 %v68_v10, %v1779_v16  ;;  %v125_v25 = vand.u32 4294901760, %v124_v17  ;;  %185 = vmatpush.msra.mxu3 %v1752_v4  ;;  %v298_v26 = vand.u32 4294901760, %v1784_v19  ;;  %v131_v27 = vand.u32 4294901760, %v130_v18  ;;  %2844 = vst [vmem:[#allocation10_spill] sm:$0xff] %v1857_v60  ;;  %v1864_v62 = vld [vmem:[#allocation2 + $0xc8] sm:$0xff]  ;;  %v1867_v63 = vld [vmem:[#allocation2 + $0xb0] sm:$0xff] }
   0xd   :  { %v1800_v29 = vsub.f32 %v61_v13, %v1788_v21  ;;  %87 = vmatpush.msra.mxu1 %v1754_v5  ;;  %157 = vmatpush.msra.mxu2 %v118_v15  ;;  %v114_v31 = vsub.f32 %v112_v14, %v113_v23  ;;  %v120_v32 = vsub.f32 %v118_v15, %v119_v24  ;;  %v304_v35 = vand.u32 4294901760, %v1797_v28  ;;  %v1870_v0 = vld [vmem:[#allocation2 + $0xb8] sm:$0xff]  ;;  %v1873_v1 = vld [vmem:[#allocation2 + $0xa0] sm:$0xff]  ;;  %v1876_v2 = vld [vmem:[#allocation2 + $0xa8] sm:$0xff] }
   0xe   :  { %v1804_v30 = vand.u32 4294901760, %v1792_v22  ;;  %187 = vmatpush.msra.mxu3 %v1754_v5  ;;  %v126_v33 = vsub.f32 %v124_v17, %v125_v25  ;;  %212 = vmatpush.msra.mxu0 %v113_v23  ;;  %v299_v34 = vsub.f32 %v1784_v19, %v298_v26  ;;  %v132_v40 = vsub.f32 %v130_v18, %v131_v27  ;;  %v1889_v6 = vld [vmem:[#allocation2 + $0x1f8] sm:$0xff]  ;;  %v1891_v7 = vld [vmem:[#allocation2 + $0x80] sm:$0xff]  ;;  %v1899_v10 = vld [vmem:[#allocation2 + $0x1e8] sm:$0xff] }
   0xf   :  { %v310_v36 = vand.u32 4294901760, %v1800_v29  ;;  %89 = vmatpush.msra.mxu1 %v1765_v9  ;;  %v115_v39 = vand.u32 4294901760, %v114_v31  ;;  %160 = vmatpush.msra.mxu2 %v124_v17  ;;  %v121_v41 = vand.u32 4294901760, %v120_v32  ;;  %v305_v43 = vsub.f32 %v1797_v28, %v304_v35  ;;  %2845 = vst [vmem:[#allocation11_spill] sm:$0xff] %v1864_v62  ;;  %v1893_v8 = vld [vmem:[#allocation2 + $0x1e0] sm:$0xff]  ;;  %v1905_v12 = vld [vmem:[#allocation2 + $0x1d0] sm:$0xff] }
  0x10   :  { %v93_v38 = vsub.f32 %v1792_v22, %v1804_v30  ;;  %189 = vmatpush.msra.mxu3 %v1765_v9  ;;  %v300_v42 = vand.u32 4294901760, %v299_v34  ;;  %216 = vmatpush.msra.mxu0 %v119_v24  ;;  %v273_v46 = vand.u32 4294901760, %v59_v37  ;;  %v127_v47 = vand.u32 4294901760, %v126_v33  ;;  %2846 = vst [vmem:[#allocation12_spill] sm:$0xff] %v1870_v0  ;;  %v1907_v13 = vld [vmem:[#allocation2 + $0x78] sm:$0xff]  ;;  %v1913_v15 = vld [vmem:[#allocation2 + $0x60] sm:$0xff] }
  0x11   :  { %v311_v44 = vsub.f32 %v1800_v29, %v310_v36  ;;  %116 = vmatpush.msrb.mxu1 %v115_v39  ;;  %163 = vmatpush.msra.mxu2 %v130_v18  ;;  %v306_v48 = vand.u32 4294901760, %v305_v43  ;;  %v133_v50 = vand.u32 4294901760, %v132_v40  ;;  %2847 = vst [vmem:[#allocation13_spill] sm:$0xff] %v1876_v2  ;;  %v1909_v14 = vld [vmem:[#allocation2 + $0x1d8] sm:$0xff]  ;;  %v1919_v17 = vld [vmem:[#allocation2 + $0x68] sm:$0xff]  ;;  %v1941_v23 = vld [vmem:[#allocation2 + $0x40] sm:$0xff] }
  0x12   :  { %v94_v45 = vand.u32 4294901760, %v93_v38  ;;  %166 = vmatmul.f32.vlgmr.msra.gmra.mxu2 %v1792_v22  ;;  %193 = vmatmul.f32.vlgmr.msra.gmra.mxu3 %v1804_v30  ;;  %v315_v49 = vsub.f32 %v59_v37, %v273_v46  ;;  %2849 = vst [vmem:[#allocation15_spill] sm:$0xff] %v1889_v6  ;;  %v1921_v18 = vld [vmem:[#allocation2 + $0x1c8] sm:$0xff]  ;;  %v1943_v24 = vld [vmem:[#allocation2 + $0x1a0] sm:$0xff]  ;;  %v1981_v37 = vld [vmem:[#allocation2 + $0x18] sm:$0xff] }
  0x13   :  { %268 = vmatpush.msrb.mxu2 %v1767_v11  ;;  %122 = vmatpush.msrb.mxu1 %v121_v41  ;;  %v312_v51 = vand.u32 4294901760, %v311_v44  ;;  %2851 = vst [vmem:[#allocation17_spill] sm:$0xff] %v1899_v10  ;;  %v1965_v31 = vld [vmem:[#allocation2 + $0x20] sm:$0xff]  ;;  %v1969_v33 = vld [vmem:[#allocation2 + $0x28] sm:$0xff]  ;;  %v1985_v38 = vld [vmem:[#allocation2 + $0x178] sm:$0xff] }
  0x14   :  { %95 = vmatmul.f32.vlgmr.msra.gmra.mxu1 %v94_v45  ;;  %301 = vmatpush.msrb.mxu3 %v300_v42  ;;  %v316_v52 = vand.u32 4294901760, %v315_v49  ;;  %2852 = vst [vmem:[#allocation18_spill] sm:$0xff] %v1907_v13  ;;  %v1967_v32 = vld [vmem:[#allocation2 + $0x180] sm:$0xff]  ;;  %v1973_v34 = vld [vmem:[#allocation2 + $0x188] sm:$0xff]  ;;  %v2001_v43 = vld [vmem:[#allocation2 + $0x150] sm:$0xff] }
  0x15   :  { %270 = vmatpush.msrb.mxu2 %v1786_v20  ;;  %220 = vmatpush.msra.mxu0 %v125_v25  ;;  %2853 = vst [vmem:[#allocation19_spill] sm:$0xff] %v1909_v14  ;;  %v1945_v25 = vld [vmem:[#allocation2 + $0x48] sm:$0xff]  ;;  %v1989_v39 = vld [vmem:[#allocation2] sm:$0xff]  ;;  %v2003_v44 = vld [vmem:[#allocation2 + $0x158] sm:$0xff] }
  0x16   :  { %128 = vmatpush.msrb.mxu1 %v127_v47  ;;  %307 = vmatpush.msrb.mxu3 %v306_v48  ;;  %v317_v53 = vsub.f32 %v315_v49, %v316_v52  ;;  %2854 = vst [vmem:[#allocation20_spill] sm:$0xff] %v1919_v17  ;;  %v1991_v40 = vld [vmem:[#allocation2 + $0x160] sm:$0xff]  ;;  %v1993_v41 = vld [vmem:[#allocation2 + $0x8] sm:$0xff]  ;;  %v2013_v47 = vld [vmem:[#allocation2 + $0x130] sm:$0xff] }
  0x17   :  { %272 = vmatpush.msrb.mxu2 %v1788_v21  ;;  %224 = vmatpush.msra.mxu0 %v131_v27  ;;  %2855 = vst [vmem:[#allocation21_spill] sm:$0xff] %v1921_v18  ;;  %v1953_v27 = vld [vmem:[#allocation2 + $0x30] sm:$0xff]  ;;  %v1997_v42 = vld [vmem:[#allocation2 + $0x168] sm:$0xff]  ;;  %v2015_v48 = vld [vmem:[#allocation2 + $0x138] sm:$0xff] }
  0x18   :  { %134 = vmatpush.msrb.mxu1 %v133_v50  ;;  %313 = vmatpush.msrb.mxu3 %v312_v51  ;;  %v318_v54 = vand.u32 4294901760, %v317_v53  ;;  %2858 = vst [vmem:[#allocation24_spill] sm:$0xff] %v1945_v25  ;;  %v2021_v50 = vld [vmem:[#allocation2 + $0x128] sm:$0xff]  ;;  %v2025_v51 = vld [vmem:[#allocation2 + $0x110] sm:$0xff]  ;;  %v2031_v53 = vld [vmem:[#allocation2 + $0x100] sm:$0xff] }
  0x19   :  { %274 = vmatpush.msrb.mxu2 %v273_v46  ;;  %226 = vmatmul.f32.vlgmr.msra.gmra.mxu0 %v1779_v16  ;;  %2862 = vst [vmem:[#allocation28_spill] sm:$0xff] %v1969_v33 }
  0x1a   :  { %243 = vmatpush.msra.mxu1 %v1750_v3  ;;  %280 = vmatmul.f32.vlgmr.msrb.gmra.mxu2 %v94_v45  ;;  %v1881_v3 = vld [vmem:[#allocation2 + $0x90] sm:$0xff]  ;;  %2863 = vst [vmem:[#allocation29_spill] sm:$0xff] %v1973_v34  ;;  %v2005_v45 = vld [vmem:[#allocation2 + $0x140] sm:$0xff] }
  0x1b   :  { %319 = vmatpush.msrb.mxu3 %v318_v54  ;;  %397 = vmatpush.msra.mxu2 %v298_v26  ;;  %v1949_v26 = vld [vmem:[#allocation2 + $0x1a8] sm:$0xff]  ;;  %2864 = vst [vmem:[#allocation30_spill] sm:$0xff] %v1981_v37 }
  0x1c   :  { %136 = vmatmul.f32.vlgmr.msrb.gmra.mxu1 %v1779_v16  ;;  %321 = vmatmul.f32.vlgmr.msrb.gmra.mxu3 %v1779_v16  ;;  %2859 = vst [vmem:[#allocation25_spill] sm:$0xff] %v1949_v26  ;;  %v2033_v54 = vld [vmem:[#allocation2 + $0x108] sm:$0xff] }
  0x1d   :  { %245 = vmatpush.msra.mxu1 %v1752_v4  ;;  %339 = vmatpush.msrb.mxu0 %v1784_v19  ;;  %v1883_v4 = vld [vmem:[#allocation2 + $0x1f0] sm:$0xff]  ;;  %2865 = vst [vmem:[#allocation31_spill] sm:$0xff] %v1985_v38 }
  0x1e   :  { %428 = vmatpush.msra.mxu3 %v1767_v11  ;;  %401 = vmatpush.msra.mxu2 %v304_v35  ;;  %v1929_v19 = vld [vmem:[#allocation2 + $0x50] sm:$0xff]  ;;  %2866 = vst [vmem:[#allocation32_spill] sm:$0xff] %v1993_v41 }
  0x1f   :  { %247 = vmatpush.msra.mxu1 %v1754_v5  ;;  %342 = vmatpush.msrb.mxu0 %v1797_v28  ;;  %v1885_v5 = vld [vmem:[#allocation2 + $0x98] sm:$0xff]  ;;  %v1955_v28 = vld [vmem:[#allocation2 + $0x190] sm:$0xff]  ;;  %2867 = vst [vmem:[#allocation33_spill] sm:$0xff] %v1997_v42 }
  0x20   :  { %430 = vmatpush.msra.mxu3 %v1786_v20  ;;  %405 = vmatpush.msra.mxu2 %v310_v36  ;;  %2848 = vst [vmem:[#allocation14_spill] sm:$0xff] %v1885_v5  ;;  %v1977_v35 = vld [vmem:[#allocation2 + $0x10] sm:$0xff] }
  0x21   :  { %249 = vmatpush.msra.mxu1 %v1765_v9  ;;  %345 = vmatpush.msrb.mxu0 %v1800_v29  ;;  %v1897_v9 = vld [vmem:[#allocation2 + $0x88] sm:$0xff]  ;;  %v1957_v29 = vld [vmem:[#allocation2 + $0x38] sm:$0xff]  ;;  %v1979_v36 = vld [vmem:[#allocation2 + $0x170] sm:$0xff]  ;;  %2868 = vst [vmem:[#allocation34_spill] sm:$0xff] %v2003_v44 }
  0x22   :  { %432 = vmatpush.msra.mxu3 %v1788_v21  ;;  %409 = vmatpush.msra.mxu2 %v316_v52  ;;  %2850 = vst [vmem:[#allocation16_spill] sm:$0xff] %v1897_v9  ;;  %v2027_v52 = vld [vmem:[#allocation2 + $0x118] sm:$0xff] }
  0x23   :  { %368 = vmatpush.msrb.mxu1 %v1767_v11  ;;  %348 = vmatpush.msrb.mxu0 %v315_v49  ;;  %v1901_v11 = vld [vmem:[#allocation2 + $0x70] sm:$0xff]  ;;  %2860 = vst [vmem:[#allocation26_spill] sm:$0xff] %v1957_v29  ;;  %v2019_v49 = vld [vmem:[#allocation2 + $0x120] sm:$0xff] }
  0x24   :  { %251 = vmatmul.f32.vlgmr.msra.gmra.mxu1 %v1779_v16  ;;  %351 = vmatmul.f32.vlgmr.msrb.gmra.mxu0 %v1792_v22  ;;  %v1937_v22 = vld [vmem:[#allocation2 + $0x1b8] sm:$0xff]  ;;  %2870 = vst [vmem:[#allocation36_spill] sm:$0xff] %v2015_v48 }
  0x25   :  { %370 = vmatpush.msrb.mxu1 %v1786_v20  ;;  %411 = vmatmul.f32.vlgmr.msra.gmra.mxu2 %v1779_v16  ;;  %v1931_v20 = vld [vmem:[#allocation2 + $0x1b0] sm:$0xff]  ;;  %2857 = vst [vmem:[#allocation23_spill] sm:$0xff] %v1937_v22 }
  0x26   :  { %434 = vmatpush.msra.mxu3 %v273_v46  ;;  %504 = vmatpush.msra.mxu0 %v1840_v55  ;;  %2871 = vst [vmem:[#allocation37_spill] sm:$0xff] %v2021_v50 }
  0x27   :  { %372 = vmatpush.msrb.mxu1 %v1788_v21  ;;  %436 = vmatmul.f32.vlgmr.msra.gmra.mxu3 %v1779_v16  ;;  %v1915_v16 = vld [vmem:[#allocation2 + $0x1c0] sm:$0xff]  ;;  %v1933_v21 = vld [vmem:[#allocation2 + $0x58] sm:$0xff]  ;;  %2872 = vst [vmem:[#allocation38_spill] sm:$0xff] %v2027_v52 }
  0x28   :  { %544 = vmatpush.msrb.mxu2 %v1844_v56  ;;  %505 = vmatpush.msra.mxu0 %v1847_v57  ;;  %2856 = vst [vmem:[#allocation22_spill] sm:$0xff] %v1933_v21  ;;  %v2236_v56 = vld [vmem:[%s2769_s7 + $0x80] sm:$0xff] }
  0x29   :  { %374 = vmatpush.msrb.mxu1 %v273_v46  ;;  %564 = vmatpush.msrb.mxu3 %v1889_v6  ;;  %v2008_v46 = vld [vmem:[#allocation2 + $0x148] sm:$0xff]  ;;  %2873 = vst [vmem:[#allocation39_spill] sm:$0xff] %v2033_v54 }
  0x2a   :  { %545 = vmatpush.msrb.mxu2 %v1851_v58  ;;  %506 = vmatpush.msra.mxu0 %v1854_v59  ;;  %2869 = vst [vmem:[#allocation35_spill] sm:$0xff] %v2008_v46  ;;  %v2099_v6 = vld [vmem:[%s2769_s7 + $0x48] sm:$0xff] }
  0x2b   :  { %524 = vmatpush.msra.mxu1 %v1883_v4  ;;  %565 = vmatpush.msrb.mxu3 %v1899_v10  ;;  %v2229_v58 = vld [vmem:[%s2769_s7 + $0x88] sm:$0xff]  ;;  %2889 = vst [vmem:[#allocation55_spill] sm:$0xff] %v2236_v56 }
  0x2c   :  { %378 = vmatmul.f32.vlgmr.msrb.gmra.mxu1 %v1804_v30  ;;  %546 = vmatpush.msrb.mxu2 %v1857_v60  ;;  %v1961_v30 = vld [vmem:[#allocation2 + $0x198] sm:$0xff]  ;;  %v2222_v60 = vld [vmem:[%s2769_s7 + $0x90] sm:$0xff]  ;;  %2888 = vst [vmem:[#allocation54_spill] sm:$0xff] %v2229_v58 }
  0x2d   :  { %507 = vmatpush.msra.mxu0 %v1860_v61  ;;  %525 = vmatpush.msra.mxu1 %v1893_v8  ;;  %2861 = vst [vmem:[#allocation27_spill] sm:$0xff] %v1961_v30 }
  0x2e   :  { %547 = vmatpush.msrb.mxu2 %v1864_v62  ;;  %566 = vmatpush.msrb.mxu3 %v1909_v14  ;;  %2887 = vst [vmem:[#allocation53_spill] sm:$0xff] %v2222_v60 }
  0x2f   :  { %508 = vmatpush.msra.mxu0 %v1867_v63  ;;  %526 = vmatpush.msra.mxu1 %v1905_v12 }
  0x30   :  { %548 = vmatpush.msrb.mxu2 %v1870_v0  ;;  %567 = vmatpush.msrb.mxu3 %v1921_v18  ;;  %v2092_v18 = vld [vmem:[%s2769_s7 + $0x50] sm:$0xff] }
  0x31   :  { %509 = vmatpush.msra.mxu0 %v1873_v1  ;;  %527 = vmatpush.msra.mxu1 %v1915_v16 }
  0x32   :  { %549 = vmatpush.msrb.mxu2 %v1876_v2  ;;  %568 = vmatpush.msrb.mxu3 %v1937_v22 }
  0x33   :  { %510 = vmatpush.msra.mxu0 %v1881_v3  ;;  %528 = vmatpush.msra.mxu1 %v1931_v20 }
  0x34   :  { %550 = vmatpush.msrb.mxu2 %v1885_v5  ;;  %569 = vmatpush.msrb.mxu3 %v1949_v26  ;;  %v2085_v26 = vld [vmem:[%s2769_s7 + $0x58] sm:$0xff] }
  0x35   :  { %511 = vmatpush.msra.mxu0 %v1891_v7  ;;  %529 = vmatpush.msra.mxu1 %v1943_v24 }
  0x36   :  { %551 = vmatpush.msrb.mxu2 %v1897_v9  ;;  %570 = vmatpush.msrb.mxu3 %v1961_v30 }
  0x37   :  { %512 = vmatpush.msra.mxu0 %v1901_v11  ;;  %530 = vmatpush.msra.mxu1 %v1955_v28 }
  0x38   :  { %552 = vmatpush.msrb.mxu2 %v1907_v13  ;;  %571 = vmatpush.msrb.mxu3 %v1973_v34  ;;  %v2080_v34 = vld [vmem:[%s2769_s7 + $0xe0] sm:$0xff] }
  0x39   :  { %513 = vmatpush.msra.mxu0 %v1913_v15  ;;  %531 = vmatpush.msra.mxu1 %v1967_v32 }
  0x3a   :  { %553 = vmatpush.msrb.mxu2 %v1919_v17  ;;  %572 = vmatpush.msrb.mxu3 %v1985_v38  ;;  %v2073_v38 = vld [vmem:[%s2769_s7 + $0x60] sm:$0xff] }
  0x3b   :  { %514 = vmatpush.msra.mxu0 %v1929_v19  ;;  %532 = vmatpush.msra.mxu1 %v1979_v36 }
  0x3c   :  { %554 = vmatpush.msrb.mxu2 %v1933_v21  ;;  %573 = vmatpush.msrb.mxu3 %v1997_v42  ;;  %v2068_v42 = vld [vmem:[%s2769_s7 + $0xe8] sm:$0xff] }
  0x3d   :  { %515 = vmatpush.msra.mxu0 %v1941_v23  ;;  %533 = vmatpush.msra.mxu1 %v1991_v40 }
  0x3e   :  { %555 = vmatpush.msrb.mxu2 %v1945_v25  ;;  %574 = vmatpush.msrb.mxu3 %v2003_v44  ;;  %v2062_v44 = vld [vmem:[%s2769_s7 + $0xf0] sm:$0xff] }
  0x3f   :  { %516 = vmatpush.msra.mxu0 %v1953_v27  ;;  %534 = vmatpush.msra.mxu1 %v2001_v43 }
  0x40   :  { %556 = vmatpush.msrb.mxu2 %v1957_v29  ;;  %575 = vmatpush.msrb.mxu3 %v2008_v46 }
  0x41   :  { %517 = vmatpush.msra.mxu0 %v1965_v31  ;;  %535 = vmatpush.msra.mxu1 %v2005_v45 }
  0x42   :  { %557 = vmatpush.msrb.mxu2 %v1969_v33  ;;  %576 = vmatpush.msrb.mxu3 %v2015_v48  ;;  %v2045_v48 = vld [vmem:[%s2769_s7 + $0x70] sm:$0xff] }
  0x43   :  { %518 = vmatpush.msra.mxu0 %v1977_v35  ;;  %536 = vmatpush.msra.mxu1 %v2013_v47 }
  0x44   :  { %558 = vmatpush.msrb.mxu2 %v1981_v37  ;;  %577 = vmatpush.msrb.mxu3 %v2021_v50  ;;  %v2040_v50 = vld [vmem:[%s2769_s7 + $0x78] sm:$0xff] }
  0x45   :  { %519 = vmatpush.msra.mxu0 %v1989_v39  ;;  %537 = vmatpush.msra.mxu1 %v2019_v49 }
  0x46   :  { %559 = vmatpush.msrb.mxu2 %v1993_v41  ;;  %578 = vmatpush.msrb.mxu3 %v2027_v52  ;;  %v2051_v52 = vld [vmem:[%s2769_s7 + $0xf8] sm:$0xff] }
  0x47   :  { %538 = vmatpush.msra.mxu1 %v2025_v51  ;;  %625 = vmatpush.msrb.mxu0 %v2040_v50 }
  0x48   :  { %579 = vmatpush.msrb.mxu3 %v2033_v54  ;;  %v2056_v54 = vld [vmem:[%s2769_s7 + $0x68] sm:$0xff] }
  0x49   :  { %539 = vmatpush.msra.mxu1 %v2031_v53  ;;  %626 = vmatpush.msrb.mxu0 %v2045_v48 }
  0x4b   :  { %648 = vmatpush.msrb.mxu1 %v2051_v52  ;;  %627 = vmatpush.msrb.mxu0 %v2056_v54 }
  0x4d   :  { %649 = vmatpush.msrb.mxu1 %v2062_v44  ;;  %628 = vmatpush.msrb.mxu0 %v2073_v38 }
  0x4f   :  { %650 = vmatpush.msrb.mxu1 %v2068_v42  ;;  %629 = vmatpush.msrb.mxu0 %v2085_v26 }
  0x51   :  { %651 = vmatpush.msrb.mxu1 %v2080_v34  ;;  %630 = vmatpush.msrb.mxu0 %v2092_v18 }
  0x53   :  { %631 = vmatpush.msrb.mxu0 %v2099_v6 }
  0x91   :  { %v96_v46 = vpop.f32.mrf.mxu1 }
  0x95   :  { %v167_v30 = vpop.f32.mrf.mxu2  ;;  %v194_v22 = vpop.f32.mrf.mxu3 }
  0x96   :  { %v227_v41 = vpop.f32.mrf.mxu0 }
  0x99   :  { %v137_v14 = vpop.f32.mrf.mxu1 }
  0x9a   :  { %v138_v10 = vadd.f32 %v137_v14, %v96_v46 }
  0x9c   :  { %v168_v37 = vadd.f32 %v167_v30, %v138_v10 }
  0x9d   :  { %v281_v29 = vpop.f32.mrf.mxu2 }
  0x9e   :  { %v195_v33 = vadd.f32 %v194_v22, %v168_v37  ;;  %v2150_v22 = vld [vmem:[%s2769_s7 + $0x28] sm:$0xff]  ;;  %v2172_v37 = vld [vmem:[%s2769_s7 + $0x18] sm:$0xff] }
  0x9f   :  { %v322_v17 = vpop.f32.mrf.mxu3  ;;  %2879 = vst [vmem:[#allocation45_spill] sm:$0xff] %v2150_v22 }
  0xa0   :  { %v228_v25 = vadd.f32 %v227_v41, %v195_v33  ;;  %v323_v9 = vadd.f32 %v322_v17, %v281_v29  ;;  %v2114_v17 = vld [vmem:[%s2769_s7 + $0x40] sm:$0xff]  ;;  %v2167_v33 = vld [vmem:[%s2769_s7 + $0xb8] sm:$0xff]  ;;  %2881 = vst [vmem:[#allocation47_spill] sm:$0xff] %v2172_v37  ;;  %v2177_v41 = vld [vmem:[%s2769_s7 + $0xb0] sm:$0xff] }
  0xa1   :  { %v252_v21 = vpop.f32.mrf.mxu1  ;;  %v352_v14 = vpop.f32.mrf.mxu0  ;;  %2876 = vst [vmem:[#allocation42_spill] sm:$0xff] %v2114_v17  ;;  %632 = vmatpush.msrb.mxu0 %v2114_v17  ;;  %v2162_v29 = vld [vmem:[%s2769_s7 + $0x20] sm:$0xff] }
  0xa2   :  { %v2103_v13 = vadd.f32 %v252_v21, %v228_v25  ;;  %v353_v46 = vadd.f32 %v352_v14, %v323_v9  ;;  %v2119_v9 = vld [vmem:[%s2769_s7 + $0xd8] sm:$0xff]  ;;  %v2141_v21 = vld [vmem:[%s2769_s7 + $0xc8] sm:$0xff]  ;;  %v2155_v25 = vld [vmem:[%s2769_s7 + $0xc0] sm:$0xff]  ;;  %2880 = vst [vmem:[#allocation46_spill] sm:$0xff] %v2162_v29 }
  0xa3   :  { %652 = vmatpush.msrb.mxu1 %v2119_v9  ;;  %v2186_v14 = vld [vmem:[%s2769_s7 + $0x10] sm:$0xff] }
  0xa4   :  { %2874 = vst [vmem:[#allocation40_spill] sm:$0xff] %v2103_v13  ;;  %520 = vmatmul.f32.vlgmr.msra.gmra.mxu0 %v2103_v13  ;;  %560 = vmatmul.f32.vlgmr.msrb.gmra.mxu2 %v2103_v13  ;;  %v2215_v13 = vld [vmem:[%s2769_s7 + $0x98] sm:$0xff] }
  0xa5   :  { %2882 = vst [vmem:[#allocation48_spill] sm:$0xff] %v2186_v14 }
  0xa6   :  { %2886 = vst [vmem:[#allocation52_spill] sm:$0xff] %v2215_v13 }
  0xa8   :  { %v412_v2 = vpop.f32.mrf.mxu2 }
  0xa9   :  { %v379_v5 = vpop.f32.mrf.mxu1 }
  0xaa   :  { %v380_v0 = vadd.f32 %v379_v5, %v353_v46  ;;  %v437_v10 = vpop.f32.mrf.mxu3  ;;  %v2136_v5 = vld [vmem:[%s2769_s7 + $0x30] sm:$0xff]  ;;  %v2191_v46 = vld [vmem:[%s2769_s7 + $0xa8] sm:$0xff] }
  0xab   :  { %2878 = vst [vmem:[#allocation44_spill] sm:$0xff] %v2136_v5 }
  0xac   :  { %v413_v30 = vadd.f32 %v412_v2, %v380_v0  ;;  %v2126_v0 = vld [vmem:[%s2769_s7 + $0x38] sm:$0xff]  ;;  %v2131_v2 = vld [vmem:[%s2769_s7 + $0xd0] sm:$0xff] }
  0xad   :  { %2877 = vst [vmem:[#allocation43_spill] sm:$0xff] %v2126_v0  ;;  %633 = vmatpush.msrb.mxu0 %v2126_v0  ;;  %653 = vmatpush.msrb.mxu1 %v2131_v2 }
  0xae   :  { %v2107_v62 = vadd.f32 %v437_v10, %v413_v30  ;;  %v2198_v10 = vld [vmem:[%s2769_s7 + $0x8] sm:$0xff]  ;;  %v2203_v30 = vld [vmem:[%s2769_s7 + $0xa0] sm:$0xff] }
  0xaf   :  { %634 = vmatpush.msrb.mxu0 %v2136_v5  ;;  %654 = vmatpush.msrb.mxu1 %v2141_v21  ;;  %2883 = vst [vmem:[#allocation49_spill] sm:$0xff] %v2198_v10 }
  0xb0   :  { %2875 = vst [vmem:[#allocation41_spill] sm:$0xff] %v2107_v62  ;;  %540 = vmatmul.f32.vlgmr.msra.gmra.mxu1 %v2107_v62  ;;  %580 = vmatmul.f32.vlgmr.msrb.gmra.mxu3 %v2107_v62  ;;  %v2210_v62 = vld [vmem:[%s2769_s7] sm:$0xff] }
  0xb1   :  { %635 = vmatpush.msrb.mxu0 %v2150_v22  ;;  %655 = vmatpush.msrb.mxu1 %v2155_v25  ;;  %2884 = vst [vmem:[#allocation50_spill] sm:$0xff] %v2203_v30 }
  0xb2   :  { %2885 = vst [vmem:[#allocation51_spill] sm:$0xff] %v2210_v62 }
  0xb3   :  { %636 = vmatpush.msrb.mxu0 %v2162_v29  ;;  %656 = vmatpush.msrb.mxu1 %v2167_v33 }
  0xb5   :  { %637 = vmatpush.msrb.mxu0 %v2172_v37  ;;  %657 = vmatpush.msrb.mxu1 %v2177_v41 }
  0xb7   :  { %638 = vmatpush.msrb.mxu0 %v2186_v14  ;;  %658 = vmatpush.msrb.mxu1 %v2191_v46 }
  0xb9   :  { %639 = vmatpush.msrb.mxu0 %v2198_v10  ;;  %659 = vmatpush.msrb.mxu1 %v2203_v30 }
  0xbb   :  { %640 = vmatpush.msrb.mxu0 %v2210_v62  ;;  %660 = vmatpush.msrb.mxu1 %v2215_v13 }
  0xbd   :  { %900 = vmatpush.msra.mxu0 %v1840_v55  ;;  %661 = vmatpush.msrb.mxu1 %v2222_v60  ;;  %v2251_v55 = vld [vmem:[%s2770_s8 + $0x8] sm:$0xff] }
  0xbe   :  { %2890 = vst [vmem:[#allocation56_spill] sm:$0xff] %v2251_v55  ;;  %725 = vmatpush.msra.mxu2 %v2251_v55 }
  0xbf   :  { %901 = vmatpush.msra.mxu0 %v1847_v57  ;;  %662 = vmatpush.msrb.mxu1 %v2229_v58  ;;  %v2256_v57 = vld [vmem:[%s2770_s8] sm:$0xff]  ;;  %s1489_s8 = sshll.u32 %s2773_s11, 4  ;;  %s1490_s8 = int_to_ptr.hbm [resolvable:$true] %s1489_s8 }
  0xc0   :  { %2891 = vst [vmem:[#allocation57_spill] sm:$0xff] %v2256_v57  ;;  %726 = vmatpush.msra.mxu2 %v2256_v57 }
  0xc1   :  { %902 = vmatpush.msra.mxu0 %v1854_v59  ;;  %663 = vmatpush.msrb.mxu1 %v2236_v56  ;;  %v1676_v59 = vmov 1.0  }
  0xc2   :  { %1499 = vmatmul.msk.f32.vlgmr.msra.gmra.mxu2 %vm707_vm1, %v1676_v59 }
  0xc3   :  { %903 = vmatpush.msra.mxu0 %v1860_v61  ;;  %920 = vmatpush.msra.mxu1 %v1883_v4  ;;  %v55_v61 = vld [vmem:[%s2764_s2] sm:$0x3] }
  0xc5   :  { %904 = vmatpush.msra.mxu0 %v1867_v63  ;;  %921 = vmatpush.msra.mxu1 %v1893_v8  ;;  %v2276_v63 = vperm.slane %v55_v61, 0  ;;  %v2285_v8 = vperm.slane %v55_v61, 1 }
  0xc7   :  { %905 = vmatpush.msra.mxu0 %v1873_v1  ;;  %922 = vmatpush.msra.mxu1 %v1905_v12 }
  0xc9   :  { %906 = vmatpush.msra.mxu0 %v1881_v3  ;;  %923 = vmatpush.msra.mxu1 %v1915_v16 }
  0xcb   :  { %907 = vmatpush.msra.mxu0 %v1891_v7  ;;  %924 = vmatpush.msra.mxu1 %v1931_v20 }
  0xcd   :  { %908 = vmatpush.msra.mxu0 %v1901_v11  ;;  %925 = vmatpush.msra.mxu1 %v1943_v24 }
  0xcf   :  { %909 = vmatpush.msra.mxu0 %v1913_v15  ;;  %926 = vmatpush.msra.mxu1 %v1955_v28 }
  0xd1   :  { %910 = vmatpush.msra.mxu0 %v1929_v19  ;;  %927 = vmatpush.msra.mxu1 %v1967_v32 }
  0xd3   :  { %911 = vmatpush.msra.mxu0 %v1941_v23  ;;  %928 = vmatpush.msra.mxu1 %v1979_v36 }
  0xd5   :  { %912 = vmatpush.msra.mxu0 %v1953_v27  ;;  %929 = vmatpush.msra.mxu1 %v1991_v40 }
  0xd7   :  { %913 = vmatpush.msra.mxu0 %v1965_v31  ;;  %930 = vmatpush.msra.mxu1 %v2001_v43 }
  0xd9   :  { %914 = vmatpush.msra.mxu0 %v1977_v35  ;;  %931 = vmatpush.msra.mxu1 %v2005_v45  ;;  %v2326_v45 = vld [vmem:[%s2765_s3] ss:$0 sm:$0xff] }
  0xda   :  { %2892 = vst [vmem:[#allocation58_spill] sm:$0xff] %v2326_v45 }
  0xdb   :  { %915 = vmatpush.msra.mxu0 %v1989_v39  ;;  %932 = vmatpush.msra.mxu1 %v2013_v47 }
  0xdd   :  { %933 = vmatpush.msra.mxu1 %v2019_v49  ;;  %v2331_v49 = vld [vmem:[%s2766_s4 + $0x8] sm:$0xff] }
  0xde   :  { %752 = vmatpush.msra.mxu3 %v2331_v49 }
  0xdf   :  { %934 = vmatpush.msra.mxu1 %v2025_v51 }
  0xe1   :  { %935 = vmatpush.msra.mxu1 %v2031_v53 }
 0x121   :  { %v521_v1 = vpop.f32.mrf.mxu0 }
 0x127   :  { %v561_v11 = vpop.f32.mrf.mxu2 }
 0x12d   :  { %v541_v3 = vpop.f32.mrf.mxu1 }
 0x12e   :  { %v542_v4 = vadd.f32 %v541_v3, %v521_v1 }
 0x130   :  { %v589_v7 = vmul.f32 %v2276_v63, %v542_v4  ;;  %v591_v20 = vmul.f32 %v542_v4, %v542_v4 }
 0x132   :  { %641 = vmatmul.f32.vlgmr.msrb.gmra.mxu0 %v589_v7 }
 0x133   :  { %v581_v12 = vpop.f32.mrf.mxu3  ;;  %984 = vmatpush.msrb.mxu0 %v2040_v50 }
 0x134   :  { %v582_v15 = vadd.f32 %v581_v12, %v561_v11 }
 0x135   :  { %985 = vmatpush.msrb.mxu0 %v2045_v48 }
 0x136   :  { %v590_v16 = vmul.f32 %v2285_v8, %v582_v15  ;;  %v592_v24 = vmul.f32 %v582_v15, %v582_v15 }
 0x137   :  { %986 = vmatpush.msrb.mxu0 %v2056_v54  ;;  %v2344_v54 = vld [vmem:[%s2771_s9 + $0x38] sm:$0xff] }
 0x138   :  { %664 = vmatmul.f32.vlgmr.msrb.gmra.mxu1 %v590_v16  ;;  %779 = vmatpush.msrb.mxu2 %v2344_v54 }
 0x139   :  { %987 = vmatpush.msrb.mxu0 %v2073_v38  ;;  %1007 = vmatpush.msrb.mxu1 %v2051_v52  ;;  %v2338_v52 = vld [vmem:[%s2766_s4] sm:$0xff] }
 0x13a   :  { %644 = vmatmul.f32.gmra.mxu0 %v591_v20  ;;  %2893 = vst [vmem:[#allocation59_spill] sm:$0xff] %v2338_v52  ;;  %753 = vmatpush.msra.mxu3 %v2338_v52 }
 0x13b   :  { %988 = vmatpush.msrb.mxu0 %v2085_v26  ;;  %1008 = vmatpush.msrb.mxu1 %v2062_v44 }
 0x13d   :  { %989 = vmatpush.msrb.mxu0 %v2092_v18  ;;  %1009 = vmatpush.msrb.mxu1 %v2068_v42 }
 0x13f   :  { %990 = vmatpush.msrb.mxu0 %v2099_v6  ;;  %1010 = vmatpush.msrb.mxu1 %v2080_v34 }
 0x140   :  { %667 = vmatmul.f32.gmra.mxu1 %v592_v24 }
 0x141   :  { %991 = vmatpush.msrb.mxu0 %v2114_v17  ;;  %1011 = vmatpush.msrb.mxu1 %v2119_v9  ;;  %v2349_v9 = vld [vmem:[%s2771_s9 + $0x30] sm:$0xff]  ;;  %v2909_v17 = vld [vmem:[#allocation32_spill] sm:$0xff] }
 0x142   :  { %780 = vmatpush.msrb.mxu2 %v2349_v9 }
 0x143   :  { %992 = vmatpush.msrb.mxu0 %v2126_v0  ;;  %1012 = vmatpush.msrb.mxu1 %v2131_v2  ;;  %v2355_v2 = vld [vmem:[%s2771_s9 + $0x28] sm:$0xff] }
 0x144   :  { %781 = vmatpush.msrb.mxu2 %v2355_v2  ;;  %v2907_v0 = vld [vmem:[#allocation28_spill] sm:$0xff] }
 0x145   :  { %993 = vmatpush.msrb.mxu0 %v2136_v5  ;;  %1013 = vmatpush.msrb.mxu1 %v2141_v21  ;;  %v2361_v21 = vld [vmem:[%s2771_s9 + $0x20] sm:$0xff]  ;;  %v728_v16 = vpop.f32.mrf.mxu2 }
 0x146   :  { %782 = vmatpush.msrb.mxu2 %v2361_v21 }
 0x147   :  { %994 = vmatpush.msrb.mxu0 %v2150_v22  ;;  %1014 = vmatpush.msrb.mxu1 %v2155_v25  ;;  %v2367_v25 = vld [vmem:[%s2771_s9 + $0x18] sm:$0xff] }
 0x148   :  { %783 = vmatpush.msrb.mxu2 %v2367_v25 }
 0x149   :  { %995 = vmatpush.msrb.mxu0 %v2162_v29  ;;  %1015 = vmatpush.msrb.mxu1 %v2167_v33 }
 0x14b   :  { %996 = vmatpush.msrb.mxu0 %v2172_v37  ;;  %1016 = vmatpush.msrb.mxu1 %v2177_v41  ;;  %v2373_v41 = vld [vmem:[%s2771_s9 + $0x10] sm:$0xff]  ;;  %v2904_v37 = vld [vmem:[#allocation22_spill] sm:$0xff] }
 0x14c   :  { %784 = vmatpush.msrb.mxu2 %v2373_v41 }
 0x14d   :  { %997 = vmatpush.msrb.mxu0 %v2186_v14  ;;  %1017 = vmatpush.msrb.mxu1 %v2191_v46  ;;  %v2903_v14 = vld [vmem:[#allocation20_spill] sm:$0xff] }
 0x14f   :  { %998 = vmatpush.msrb.mxu0 %v2198_v10  ;;  %1018 = vmatpush.msrb.mxu1 %v2203_v30  ;;  %v2901_v30 = vld [vmem:[#allocation16_spill] sm:$0xff]  ;;  %v2902_v10 = vld [vmem:[#allocation18_spill] sm:$0xff] }
 0x151   :  { %999 = vmatpush.msrb.mxu0 %v2210_v62  ;;  %1019 = vmatpush.msrb.mxu1 %v2215_v13  ;;  %v2900_v13 = vld [vmem:[#allocation14_spill] sm:$0xff] }
 0x153   :  { %1020 = vmatpush.msrb.mxu1 %v2222_v60 }
 0x155   :  { %1021 = vmatpush.msrb.mxu1 %v2229_v58  ;;  %v2898_v58 = vld [vmem:[#allocation12_spill] sm:$0xff] }
 0x157   :  { %1022 = vmatpush.msrb.mxu1 %v2236_v56 }
 0x1af   :  { %v642_v6 = vpop.f32.mrf.mxu0 }
 0x1b5   :  { %v665_v18 = vpop.f32.mrf.mxu1 }
 0x1b6   :  { %v666_v11 = vadd.f32 %v665_v18, %v642_v6  ;;  %v2390_v6 = vld [vmem:[%s2771_s9] sm:$0xff] }
 0x1b7   :  { %v645_v26 = vpop.f32.mrf.mxu0 }
 0x1bd   :  { %v668_v28 = vpop.f32.mrf.mxu1 }
 0x1be   :  { %v669_v32 = vadd.f32 %v668_v28, %v645_v26 }
 0x1c0   :  { %1520 = vrsqrt.f32 %v669_v32  ;;  %vm678_vm2 = vcmp.eq.f32.partialorder %v669_v32, inf  ;;  %v681_v47 = vand.u32 2147483648, %v669_v32  ;;  %vm680_vm3 = vcmp.eq.f32.partialorder %v669_v32, 0.0 }
 0x1c6   :  { %v1521_v34 = vpop.eup %1520 }
 0x1c7   :  { %v672_v36 = vmul.f32 %v1521_v34, %v669_v32 }
 0x1c9   :  { %v673_v38 = vmul.f32 %v1521_v34, %v672_v36 }
 0x1cb   :  { %v674_v40 = vmul.f32 0.5, %v673_v38  ;;  %v2401_v38 = vld [vmem:[%s2767_s5 + $0x38] sm:$0xff] }
 0x1cc   :  { %826 = vmatpush.msrb.mxu3 %v2401_v38 }
 0x1cd   :  { %v675_v42 = vsub.f32 1.5, %v674_v40  ;;  %v2407_v40 = vld [vmem:[%s2767_s5 + $0x30] sm:$0xff] }
 0x1ce   :  { %827 = vmatpush.msrb.mxu3 %v2407_v40 }
 0x1cf   :  { %v676_v43 = vmul.f32 %v1521_v34, %v675_v42  ;;  %v2384_v34 = vld [vmem:[%s2771_s9 + $0x8] sm:$0xff] }
 0x1d0   :  { %785 = vmatpush.msrb.mxu2 %v2384_v34  ;;  %v2413_v42 = vld [vmem:[%s2767_s5 + $0x28] sm:$0xff] }
 0x1d1   :  { %v677_v44 = vmul.f32 %v676_v43, %v669_v32  ;;  %828 = vmatpush.msrb.mxu3 %v2413_v42  ;;  %v2419_v43 = vld [vmem:[%s2767_s5 + $0x20] sm:$0xff] }
 0x1d2   :  { %786 = vmatpush.msrb.mxu2 %v2390_v6 }
 0x1d3   :  { %v679_v48 = vsel %vm678_vm2, %v669_v32, %v677_v44  ;;  %829 = vmatpush.msrb.mxu3 %v2419_v43  ;;  %v2425_v44 = vld [vmem:[%s2772_s10 + $0x70] sm:$0xff] }
 0x1d4   :  { %v682_v50 = vsel %vm680_vm3, %v681_v47, %v679_v48  ;;  %864 = vmatpush.msra.mxu2 %v2425_v44  ;;  %v2431_v47 = vld [vmem:[%s2767_s5 + $0x18] sm:$0xff]  ;;  %v2437_v48 = vld [vmem:[%s2772_s10 + $0x60] sm:$0xff] }
 0x1d5   :  { %v686_v51 = vmul.f32 %v2326_v45, %v682_v50  ;;  %830 = vmatpush.msrb.mxu3 %v2431_v47  ;;  %v2443_v50 = vld [vmem:[%s2767_s5 + $0x10] sm:$0xff] }
 0x1d6   :  { %865 = vmatpush.msra.mxu2 %v2437_v48 }
 0x1d7   :  { %v687_v53 = vadd.f32 1e-08, %v686_v51  ;;  %831 = vmatpush.msrb.mxu3 %v2443_v50  ;;  %v2449_v51 = vld [vmem:[%s2772_s10 + $0x50] sm:$0xff] }
 0x1d8   :  { %866 = vmatpush.msra.mxu2 %v2449_v51 }
 0x1d9   :  { %1522 = vrcp.f32 %v687_v53  ;;  %v699_v61 = vand.u32 2147483648, %v687_v53  ;;  %v697_v3 = vand.u32 2147483647, %v687_v53  ;;  %vm693_vm5 = vweird.f32 %v687_v53 }
 0x1da   :  { %1524 = vrcp.f32 %v728_v16  ;;  %v2526_v16 = vld [vmem:[%s2772_s10 + $0x28] sm:$0xff] }
 0x1db   :  { %v700_v7 = vor.u32 1.1754944e-38, %v699_v61  ;;  %vm698_vm7 = vcmp.eq.f32.partialorder %v697_v3, 8.507059e+37  ;;  %v2478_v61 = vld [vmem:[%s2772_s10 + $0x78] sm:$0xff]  ;;  %v2490_v3 = vld [vmem:[%s2772_s10 + $0x68] sm:$0xff] }
 0x1df   :  { %v1523_v33 = vpop.eup %1522 }
 0x1e0   :  { %v689_v46 = vmul.f32 %v1523_v33, %v687_v53  ;;  %vm694_vm4 = vweird.f32 %v1523_v33  ;;  %v1525_v26 = vpop.eup %1524  ;;  %v2455_v53 = vld [vmem:[%s2767_s5 + $0x8] sm:$0xff] }
 0x1e1   :  { %vm695_vm6 = vmor %vm693_vm5, %vm694_vm4  ;;  %832 = vmatpush.msrb.mxu3 %v2455_v53 }
 0x1e2   :  { %v690_v59 = vsub.f32 1.0, %v689_v46  ;;  %v2467_v46 = vld [vmem:[%s2767_s5] sm:$0xff] }
 0x1e3   :  { %833 = vmatpush.msrb.mxu3 %v2467_v46 }
 0x1e4   :  { %v691_v1 = vmul.f32 %v1523_v33, %v690_v59  ;;  %v2473_v59 = vld [vmem:[%s2772_s10 + $0x30] sm:$0xff] }
 0x1e6   :  { %v692_v4 = vadd.f32 %v1523_v33, %v691_v1  ;;  %v2485_v1 = vld [vmem:[%s2772_s10 + $0x20] sm:$0xff] }
 0x1e8   :  { %v696_v12 = vsel %vm695_vm6, %v1523_v33, %v692_v4  ;;  %v2461_v33 = vld [vmem:[%s2772_s10 + $0x40] sm:$0xff]  ;;  %v2497_v4 = vld [vmem:[%s2772_s10 + $0x10] sm:$0xff] }
 0x1e9   :  { %v701_v15 = vsel %vm698_vm7, %v700_v7, %v696_v12  ;;  %867 = vmatpush.msra.mxu2 %v2461_v33  ;;  %v2502_v7 = vld [vmem:[%s2772_s10 + $0x58] sm:$0xff]  ;;  %v2514_v12 = vld [vmem:[%s2772_s10 + $0x48] sm:$0xff] }
 0x1ea   :  { %v702_v20 = vmul.f32 %v701_v15, %v666_v11  ;;  %v2509_v11 = vld [vmem:[%s2772_s10] sm:$0xff]  ;;  %v2521_v15 = vld [vmem:[%s2772_s10 + $0x38] sm:$0xff] }
 0x1eb   :  { %868 = vmatpush.msra.mxu2 %v2473_v59 }
 0x1ec   :  { %v703_v24 = vsub.f32 0.0, %v702_v20  ;;  %v2894_v20 = vld [vmem:[#allocation8_spill] sm:$0xff] }
 0x1ed   :  { %869 = vmatpush.msra.mxu2 %v2485_v1 }
 0x1ee   :  { %1526 = vtanh.f32 %v703_v24  ;;  %v2533_v24 = vld [vmem:[%s2772_s10 + $0x18] sm:$0xff] }
 0x1ef   :  { %870 = vmatpush.msra.mxu2 %v2497_v4 }
 0x1f1   :  { %871 = vmatpush.msra.mxu2 %v2509_v11 }
 0x1f4   :  { %v2377_v28 = vpop.eup %1526 }
 0x1f5   :  { %v732_v32 = vadd.f32 %v2377_v28, %v1525_v26  ;;  %v2895_v26 = vld [vmem:[#allocation9_spill] sm:$0xff] }
 0x1f7   :  { %1500 = vmatmul.msk.f32.vlgmr.msra.gmra.mxu3 %vm707_vm1, %v732_v32  ;;  %v2540_v32 = vld [vmem:[%s2772_s10 + $0x8] sm:$0xff] }
 0x1f8   :  { %884 = vmatpush.msra.mxu3 %v2478_v61 }
 0x1fa   :  { %885 = vmatpush.msra.mxu3 %v2490_v3 }
 0x1fc   :  { %886 = vmatpush.msra.mxu3 %v2502_v7 }
 0x1fe   :  { %887 = vmatpush.msra.mxu3 %v2514_v12 }
 0x200   :  { %888 = vmatpush.msra.mxu3 %v2521_v15 }
 0x202   :  { %889 = vmatpush.msra.mxu3 %v2526_v16 }
 0x204   :  { %890 = vmatpush.msra.mxu3 %v2533_v24 }
 0x206   :  { %891 = vmatpush.msra.mxu3 %v2540_v32 }
 0x27a   :  { %v2393_v18 = vpop.f32.mrf.mxu3 }
 0x27b   :  { %v758_v36 = vmul.f32 %v2393_v18, %v2393_v18 }
 0x27d   :  { %1501 = vmatmul.msk.f32.vlgmr.msrb.gmra.mxu2 %vm767_vm8, %v758_v36  ;;  %v2896_v36 = vld [vmem:[#allocation10_spill] sm:$0xff] }
 0x27e   :  { %940 = vmatpush.msrb.mxu2 %v2894_v20  ;;  %v2897_v20 = vld [vmem:[#allocation11_spill] sm:$0xff] }
 0x280   :  { %941 = vmatpush.msrb.mxu2 %v2895_v26  ;;  %v2899_v26 = vld [vmem:[#allocation13_spill] sm:$0xff] }
 0x282   :  { %942 = vmatpush.msrb.mxu2 %v2896_v36 }
 0x284   :  { %943 = vmatpush.msrb.mxu2 %v2897_v20 }
 0x286   :  { %944 = vmatpush.msrb.mxu2 %v2898_v58  ;;  %v2905_v58 = vld [vmem:[#allocation24_spill] sm:$0xff] }
 0x288   :  { %945 = vmatpush.msrb.mxu2 %v2899_v26  ;;  %v2906_v26 = vld [vmem:[#allocation26_spill] sm:$0xff] }
 0x28a   :  { %946 = vmatpush.msrb.mxu2 %v2900_v13 }
 0x28c   :  { %947 = vmatpush.msrb.mxu2 %v2901_v30 }
 0x28e   :  { %948 = vmatpush.msrb.mxu2 %v2902_v10 }
 0x290   :  { %949 = vmatpush.msrb.mxu2 %v2903_v14 }
 0x292   :  { %950 = vmatpush.msrb.mxu2 %v2904_v37 }
 0x294   :  { %951 = vmatpush.msrb.mxu2 %v2905_v58  ;;  %v2917_v58 = vld [vmem:[#allocation29_spill] sm:$0xff] }
 0x296   :  { %952 = vmatpush.msrb.mxu2 %v2906_v26  ;;  %v2918_v26 = vld [vmem:[#allocation31_spill] sm:$0xff] }
 0x298   :  { %953 = vmatpush.msrb.mxu2 %v2907_v0 }
 0x300   :  { %v788_v56 = vpop.f32.mrf.mxu2 }
 0x301   :  { %v795_v60 = vadd.f32 1e-08, %v788_v56  ;;  %v792_v62 = vadd.f32 1.0, %v788_v56  ;;  %v791_v30 = vmul.f32 %v788_v56, %v2393_v18  ;;  %v2911_v56 = vld [vmem:[#allocation17_spill] sm:$0xff] }
 0x302   :  { %v2915_v18 = vld [vmem:[#allocation25_spill] sm:$0xff] }
 0x303   :  { %1528 = vrsqrt.f32 %v795_v60  ;;  %vm802_vm10 = vweird.f32 %v795_v60 }
 0x304   :  { %1530 = vrcp.f32 %v792_v62  ;;  %v2908_v62 = vld [vmem:[#allocation30_spill] sm:$0xff] }
 0x305   :  { %954 = vmatpush.msrb.mxu2 %v2908_v62 }
 0x307   :  { %955 = vmatpush.msrb.mxu2 %v2909_v17 }
 0x309   :  { %v1529_v36 = vpop.eup %1528 }
 0x30a   :  { %v797_v20 = vmul.f32 %v1529_v36, %v795_v60  ;;  %v1531_v5 = vpop.eup %1530  ;;  %vm803_vm9 = vweird.f32 %v1529_v36  ;;  %v2912_v60 = vld [vmem:[#allocation19_spill] sm:$0xff] }
 0x30b   :  { %v794_v14 = vmul.f32 %v1531_v5, %v791_v30  ;;  %vm804_vm11 = vmor %vm802_vm10, %vm803_vm9  ;;  %v2913_v5 = vld [vmem:[#allocation21_spill] sm:$0xff]  ;;  %v2920_v30 = vld [vmem:[#allocation34_spill] sm:$0xff] }
 0x30c   :  { %v798_v29 = vmul.f32 %v1529_v36, %v797_v20 }
 0x30e   :  { %v799_v22 = vmul.f32 0.5, %v798_v29  ;;  %v2914_v29 = vld [vmem:[#allocation23_spill] sm:$0xff] }
 0x310   :  { %v800_v13 = vsub.f32 1.5, %v799_v22  ;;  %v2910_v22 = vld [vmem:[#allocation15_spill] sm:$0xff] }
 0x312   :  { %v801_v10 = vmul.f32 %v1529_v36, %v800_v13  ;;  %v2919_v13 = vld [vmem:[#allocation33_spill] sm:$0xff] }
 0x314   :  { %v805_v37 = vsel %vm804_vm11, %v1529_v36, %v801_v10  ;;  %v2916_v36 = vld [vmem:[#allocation27_spill] sm:$0xff] }
 0x315   :  { %v806_v20 = vmul.f32 %v805_v37, %v794_v14  ;;  %v2921_v10 = vld [vmem:[#allocation35_spill] sm:$0xff]  ;;  %v2922_v14 = vld [vmem:[#allocation36_spill] sm:$0xff]  ;;  %v2923_v37 = vld [vmem:[#allocation37_spill] sm:$0xff] }
 0x317   :  { %1502 = vmatmul.msk.f32.vlgmr.msrb.gmra.mxu3 %vm767_vm8, %v806_v20  ;;  %1503 = vmatmul.msk.f32.vlgmr.msra.gmra.mxu2 %vm767_vm8, %v806_v20 }
 0x318   :  { %960 = vmatpush.msrb.mxu3 %v2910_v22  ;;  %1084 = vmatpush.msra.mxu2 %v2251_v55  ;;  %v2925_v22 = vld [vmem:[#allocation39_spill] sm:$0xff] }
 0x31a   :  { %961 = vmatpush.msrb.mxu3 %v2911_v56  ;;  %1085 = vmatpush.msra.mxu2 %v2256_v57  ;;  %v2926_v57 = vld [vmem:[#allocation40_spill] sm:$0xff] }
 0x31c   :  { %962 = vmatpush.msrb.mxu3 %v2912_v60 }
 0x31e   :  { %963 = vmatpush.msrb.mxu3 %v2913_v5 }
 0x31f   :  { %1504 = vmatmul.msk.f32.vlgmr.msra.gmra.mxu3 %vm767_vm8, %v806_v20  ;;  %v2924_v20 = vld [vmem:[#allocation38_spill] sm:$0xff] }
 0x320   :  { %964 = vmatpush.msrb.mxu3 %v2914_v29 }
 0x322   :  { %965 = vmatpush.msrb.mxu3 %v2915_v18 }
 0x324   :  { %966 = vmatpush.msrb.mxu3 %v2916_v36 }
 0x326   :  { %967 = vmatpush.msrb.mxu3 %v2917_v58 }
 0x328   :  { %968 = vmatpush.msrb.mxu3 %v2918_v26 }
 0x32a   :  { %969 = vmatpush.msrb.mxu3 %v2919_v13 }
 0x32c   :  { %970 = vmatpush.msrb.mxu3 %v2920_v30 }
 0x32e   :  { %971 = vmatpush.msrb.mxu3 %v2921_v10 }
 0x330   :  { %972 = vmatpush.msrb.mxu3 %v2922_v14 }
 0x332   :  { %973 = vmatpush.msrb.mxu3 %v2923_v37 }
 0x334   :  { %974 = vmatpush.msrb.mxu3 %v2924_v20 }
 0x336   :  { %975 = vmatpush.msrb.mxu3 %v2925_v22 }
 0x338   :  { %1110 = vmatpush.msra.mxu3 %v2331_v49 }
 0x33a   :  { %1111 = vmatpush.msra.mxu3 %v2338_v52 }
 0x39a   :  { %v835_v56 = vpop.f32.mrf.mxu3  ;;  %v873_v60 = vpop.f32.mrf.mxu2 }
 0x39b   :  { %v2583_v5 = vmul.f32 %v2377_v28, %v835_v56  ;;  %v896_v55 = vadd.f32 %v873_v60, %v2926_v57  ;;  %v2927_v57 = vld [vmem:[#allocation41_spill] sm:$0xff]  ;;  %v1573_v56 = vld [vmem:[#allocation2 + $0xc8] sm:$0xff]  ;;  %v1574_v60 = vld [vmem:[#allocation2 + $0x60] sm:$0xff] }
 0x39d   :  { %v2586_v45 = vmul.f32 0.5, %v896_v55  ;;  %v1061_v37 = vsel %vm707_vm1, %v2583_v5, -inf }
 0x39e   :  { %1062 = vmax.xlane.f32.xlu0 %v1061_v37  ;;  %v1572_v37 = vld [vmem:[#allocation2 + $0x1f8] sm:$0xff] }
 0x39f   :  { %916 = vmatmul.f32.vlgmr.msra.gmra.mxu0 %v2586_v45  ;;  %956 = vmatmul.f32.vlgmr.msrb.gmra.mxu2 %v2586_v45 }
 0x3a0   :  { %1128 = vmatpush.msrb.mxu2 %v2344_v54  ;;  %1189 = vmatpush.msra.mxu0 %v2425_v44  ;;  %v1561_v44 = vld [vmem:[#allocation2 + $0xe0] sm:$0xff] }
 0x3a2   :  { %v893_v52 = vpop.f32.mrf.mxu3  ;;  %1129 = vmatpush.msrb.mxu2 %v2349_v9  ;;  %1190 = vmatpush.msra.mxu0 %v2437_v48 }
 0x3a3   :  { %v897_v55 = vadd.f32 %v893_v52, %v2927_v57  ;;  %v1575_v57 = vld [vmem:[#allocation2 + $0x1e8] sm:$0xff] }
 0x3a4   :  { %1130 = vmatpush.msrb.mxu2 %v2355_v2  ;;  %1191 = vmatpush.msra.mxu0 %v2449_v51  ;;  %v1563_v51 = vld [vmem:[#allocation2 + $0xc0] sm:$0xff] }
 0x3a5   :  { %v2599_v28 = vmul.f32 0.5, %v897_v55  ;;  %v1576_v55 = vld [vmem:[#allocation2 + $0xb8] sm:$0xff] }
 0x3a6   :  { %1131 = vmatpush.msrb.mxu2 %v2361_v21  ;;  %1192 = vmatpush.msra.mxu0 %v2461_v33  ;;  %v1564_v33 = vld [vmem:[#allocation2 + $0xb0] sm:$0xff] }
 0x3a7   :  { %936 = vmatmul.f32.vlgmr.msra.gmra.mxu1 %v2599_v28  ;;  %976 = vmatmul.f32.vlgmr.msrb.gmra.mxu3 %v2599_v28 }
 0x3a8   :  { %1132 = vmatpush.msrb.mxu2 %v2367_v25  ;;  %1209 = vmatpush.msra.mxu1 %v2478_v61 }
 0x3a9   :  { %1167 = vmatpush.msrb.mxu3 %v2401_v38  ;;  %1193 = vmatpush.msra.mxu0 %v2473_v59  ;;  %v1565_v59 = vld [vmem:[#allocation2 + $0xa0] sm:$0xff] }
 0x3aa   :  { %1133 = vmatpush.msrb.mxu2 %v2373_v41  ;;  %1210 = vmatpush.msra.mxu1 %v2490_v3  ;;  %v1566_v3 = vld [vmem:[#allocation2 + $0xf8] sm:$0xff] }
 0x3ab   :  { %1168 = vmatpush.msrb.mxu3 %v2407_v40  ;;  %1194 = vmatpush.msra.mxu0 %v2485_v1 }
 0x3ac   :  { %1134 = vmatpush.msrb.mxu2 %v2384_v34  ;;  %1211 = vmatpush.msra.mxu1 %v2502_v7 }
 0x3ad   :  { %1169 = vmatpush.msrb.mxu3 %v2413_v42  ;;  %1195 = vmatpush.msra.mxu0 %v2497_v4  ;;  %v1567_v4 = vld [vmem:[#allocation2 + $0x90] sm:$0xff] }
 0x3ae   :  { %1135 = vmatpush.msrb.mxu2 %v2390_v6  ;;  %1212 = vmatpush.msra.mxu1 %v2514_v12  ;;  %v1569_v12 = vld [vmem:[#allocation2 + $0x80] sm:$0xff] }
 0x3af   :  { %1170 = vmatpush.msrb.mxu3 %v2419_v43  ;;  %1196 = vmatpush.msra.mxu0 %v2509_v11  ;;  %v1560_v43 = vld [vmem:[#allocation2 + $0xf0] sm:$0xff]  ;;  %v1568_v11 = vld [vmem:[#allocation2 + $0xe8] sm:$0xff] }
 0x3b0   :  { %1213 = vmatpush.msra.mxu1 %v2521_v15 }
 0x3b1   :  { %1171 = vmatpush.msrb.mxu3 %v2431_v47  ;;  %v1562_v47 = vld [vmem:[#allocation2 + $0xd0] sm:$0xff] }
 0x3b2   :  { %1214 = vmatpush.msra.mxu1 %v2526_v16  ;;  %v1570_v16 = vld [vmem:[#allocation2 + $0xd8] sm:$0xff] }
 0x3b3   :  { %1172 = vmatpush.msrb.mxu3 %v2443_v50 }
 0x3b4   :  { %1215 = vmatpush.msra.mxu1 %v2533_v24  ;;  %v1571_v24 = vld [vmem:[#allocation2 + $0x70] sm:$0xff] }
 0x3b5   :  { %1173 = vmatpush.msrb.mxu3 %v2455_v53 }
 0x3b6   :  { %1216 = vmatpush.msra.mxu1 %v2540_v32 }
 0x3b7   :  { %1174 = vmatpush.msrb.mxu3 %v2467_v46 }
 0x411   :  { %v1063_v52 = vpop.xlane.xlu0 %1062 }
 0x412   :  { %v1064_v38 = vsub.f32 %v2583_v5, %v1063_v52  ;;  %v1577_v52 = vld [vmem:[#allocation2 + $0x1d8] sm:$0xff] }
 0x414   :  { %v1065_v40 = vmul.f32 1.442695, %v1064_v38  ;;  %v1578_v38 = vld [vmem:[#allocation2 + $0xa8] sm:$0xff] }
 0x416   :  { %1532 = vpow2.f32 %v1065_v40 }
 0x41c   :  { %v2630_v42 = vpop.eup %1532  ;;  %v917_v48 = vpop.f32.mrf.mxu0 }
 0x41d   :  { %1505 = vmatmul.msk.f32.vlgmr.msra.gmra.mxu2 %vm707_vm1, %v2630_v42 }
 0x41e   :  { %1225 = vmatpush.msra.mxu2 %v1560_v43  ;;  %v1579_v43 = vld [vmem:[#allocation2 + $0x1c8] sm:$0xff] }
 0x420   :  { %1226 = vmatpush.msra.mxu2 %v1561_v44  ;;  %v1580_v44 = vld [vmem:[#allocation2 + $0x98] sm:$0xff] }
 0x422   :  { %1227 = vmatpush.msra.mxu2 %v1562_v47  ;;  %v957_v61 = vpop.f32.mrf.mxu2  ;;  %v1581_v47 = vld [vmem:[#allocation2 + $0x88] sm:$0xff] }
 0x424   :  { %v937_v50 = vpop.f32.mrf.mxu1  ;;  %1228 = vmatpush.msra.mxu2 %v1563_v51  ;;  %v2929_v51 = vld [vmem:[#allocation58_spill] sm:$0xff] }
 0x425   :  { %v938_v53 = vadd.f32 %v937_v50, %v917_v48 }
 0x426   :  { %1229 = vmatpush.msra.mxu2 %v1564_v33 }
 0x427   :  { %v980_v46 = vmul.f32 %v938_v53, %v2276_v63  ;;  %v982_v32 = vmul.f32 %v938_v53, %v938_v53 }
 0x428   :  { %1230 = vmatpush.msra.mxu2 %v1565_v59 }
 0x429   :  { %1000 = vmatmul.f32.vlgmr.msrb.gmra.mxu0 %v980_v46 }
 0x42a   :  { %v977_v1 = vpop.f32.mrf.mxu3  ;;  %1265 = vmatpush.msrb.mxu0 %v1566_v3  ;;  %1231 = vmatpush.msra.mxu2 %v1567_v4 }
 0x42b   :  { %v978_v7 = vadd.f32 %v977_v1, %v957_v61 }
 0x42c   :  { %1266 = vmatpush.msrb.mxu0 %v1568_v11  ;;  %1232 = vmatpush.msra.mxu2 %v1569_v12 }
 0x42d   :  { %v981_v15 = vmul.f32 %v978_v7, %v2285_v8  ;;  %v983_v40 = vmul.f32 %v978_v7, %v978_v7 }
 0x42e   :  { %1267 = vmatpush.msrb.mxu0 %v1570_v16  ;;  %1233 = vmatpush.msra.mxu2 %v1571_v24 }
 0x42f   :  { %1023 = vmatmul.f32.vlgmr.msrb.gmra.mxu1 %v981_v15 }
 0x430   :  { %1285 = vmatpush.msrb.mxu1 %v1572_v37  ;;  %1268 = vmatpush.msrb.mxu0 %v1573_v56 }
 0x431   :  { %1003 = vmatmul.f32.gmra.mxu0 %v982_v32  ;;  %1234 = vmatpush.msra.mxu2 %v1574_v60 }
 0x432   :  { %1286 = vmatpush.msrb.mxu1 %v1575_v57  ;;  %1269 = vmatpush.msrb.mxu0 %v1576_v55  ;;  %v1587_v55 = vld [vmem:[#allocation2 + $0x1f0] sm:$0xff] }
 0x433   :  { %1235 = vmatpush.msra.mxu2 %v1929_v19  ;;  %v1582_v19 = vld [vmem:[#allocation2 + $0x78] sm:$0xff] }
 0x434   :  { %1287 = vmatpush.msrb.mxu1 %v1577_v52  ;;  %1270 = vmatpush.msrb.mxu0 %v1578_v38  ;;  %v1588_v52 = vld [vmem:[#allocation2 + $0x1e0] sm:$0xff]  ;;  %v1589_v38 = vld [vmem:[#allocation2 + $0x1d0] sm:$0xff] }
 0x435   :  { %1236 = vmatpush.msra.mxu2 %v1941_v23  ;;  %v1583_v23 = vld [vmem:[#allocation2 + $0x68] sm:$0xff] }
 0x436   :  { %1288 = vmatpush.msrb.mxu1 %v1579_v43  ;;  %1271 = vmatpush.msrb.mxu0 %v1580_v44  ;;  %v1591_v43 = vld [vmem:[#allocation2 + $0x1b0] sm:$0xff]  ;;  %v1592_v44 = vld [vmem:[#allocation2 + $0x1a0] sm:$0xff] }
 0x437   :  { %1026 = vmatmul.f32.gmra.mxu1 %v983_v40  ;;  %1237 = vmatpush.msra.mxu2 %v1953_v27  ;;  %v1584_v27 = vld [vmem:[#allocation2 + $0x58] sm:$0xff]  ;;  %v1590_v40 = vld [vmem:[#allocation2 + $0x1c0] sm:$0xff] }
 0x438   :  { %1289 = vmatpush.msrb.mxu1 %v2914_v29  ;;  %1272 = vmatpush.msrb.mxu0 %v1581_v47  ;;  %v1585_v29 = vld [vmem:[#allocation2 + $0x48] sm:$0xff]  ;;  %v1593_v47 = vld [vmem:[#allocation2 + $0x190] sm:$0xff] }
 0x439   :  { %1238 = vmatpush.msra.mxu2 %v1965_v31  ;;  %v1586_v31 = vld [vmem:[#allocation2 + $0x38] sm:$0xff] }
 0x43a   :  { %1290 = vmatpush.msrb.mxu1 %v2915_v18  ;;  %1273 = vmatpush.msrb.mxu0 %v1582_v19  ;;  %v1595_v19 = vld [vmem:[#allocation2 + $0x170] sm:$0xff] }
 0x43b   :  { %1239 = vmatpush.msra.mxu2 %v1977_v35  ;;  %v2928_v35 = vld [vmem:[#allocation37_spill] sm:$0xff] }
 0x43c   :  { %1291 = vmatpush.msrb.mxu1 %v2916_v36  ;;  %1274 = vmatpush.msrb.mxu0 %v1583_v23  ;;  %v1596_v23 = vld [vmem:[#allocation2 + $0x160] sm:$0xff] }
 0x43d   :  { %1240 = vmatpush.msra.mxu2 %v1989_v39 }
 0x43e   :  { %1292 = vmatpush.msrb.mxu1 %v2917_v58  ;;  %1275 = vmatpush.msrb.mxu0 %v1584_v27  ;;  %v1597_v27 = vld [vmem:[#allocation2 + $0x150] sm:$0xff] }
 0x440   :  { %1293 = vmatpush.msrb.mxu1 %v2918_v26  ;;  %1276 = vmatpush.msrb.mxu0 %v1585_v29  ;;  %v1598_v29 = vld [vmem:[#allocation2 + $0x140] sm:$0xff] }
 0x442   :  { %1294 = vmatpush.msrb.mxu1 %v2919_v13  ;;  %1277 = vmatpush.msrb.mxu0 %v1586_v31  ;;  %v1599_v31 = vld [vmem:[#allocation2 + $0x130] sm:$0xff] }
 0x444   :  { %1295 = vmatpush.msrb.mxu1 %v2920_v30  ;;  %1278 = vmatpush.msrb.mxu0 %v2907_v0 }
 0x446   :  { %1296 = vmatpush.msrb.mxu1 %v2921_v10  ;;  %1279 = vmatpush.msrb.mxu0 %v2908_v62 }
 0x448   :  { %1297 = vmatpush.msrb.mxu1 %v2922_v14  ;;  %1280 = vmatpush.msrb.mxu0 %v2909_v17 }
 0x44a   :  { %1298 = vmatpush.msrb.mxu1 %v2928_v35  ;;  %v1600_v35 = vld [vmem:[#allocation2 + $0x120] sm:$0xff] }
 0x44c   :  { %1299 = vmatpush.msrb.mxu1 %v2924_v20 }
 0x44e   :  { %1300 = vmatpush.msrb.mxu1 %v2925_v22 }
 0x4a0   :  { %v1087_v7 = vpop.f32.mrf.mxu2 }
 0x4a6   :  { %v1001_v39 = vpop.f32.mrf.mxu0 }
 0x4ac   :  { %v1024_v18 = vpop.f32.mrf.mxu1 }
 0x4ad   :  { %v1025_v12 = vadd.f32 %v1024_v18, %v1001_v39  ;;  %v1601_v39 = vld [vmem:[#allocation2 + $0x110] sm:$0xff]  ;;  %v1602_v18 = vld [vmem:[#allocation2 + $0x100] sm:$0xff] }
 0x4ae   :  { %v1004_v36 = vpop.f32.mrf.mxu0 }
 0x4b4   :  { %v1027_v58 = vpop.f32.mrf.mxu1 }
 0x4b5   :  { %v1028_v26 = vadd.f32 %v1027_v58, %v1004_v36 }
 0x4b7   :  { %1534 = vrsqrt.f32 %v1028_v26  ;;  %vm1037_vm12 = vcmp.eq.f32.partialorder %v1028_v26, inf  ;;  %v1040_v17 = vand.u32 2147483648, %v1028_v26  ;;  %vm1039_vm13 = vcmp.eq.f32.partialorder %v1028_v26, 0.0 }
 0x4bd   :  { %v1535_v0 = vpop.eup %1534 }
 0x4be   :  { %v1031_v13 = vmul.f32 %v1535_v0, %v1028_v26 }
 0x4c0   :  { %v1032_v30 = vmul.f32 %v1535_v0, %v1031_v13  ;;  %v1605_v13 = vld [vmem:[%s2769_s7 + $0x68] sm:$0xff] }
 0x4c2   :  { %v1033_v62 = vmul.f32 0.5, %v1032_v30  ;;  %v1606_v30 = vld [vmem:[%s2769_s7 + $0x60] sm:$0xff] }
 0x4c4   :  { %v1034_v10 = vsub.f32 1.5, %v1033_v62  ;;  %v1607_v62 = vld [vmem:[%s2769_s7 + $0x58] sm:$0xff] }
 0x4c6   :  { %v1035_v14 = vmul.f32 %v1535_v0, %v1034_v10  ;;  %v1604_v0 = vld [vmem:[%s2769_s7 + $0x70] sm:$0xff] }
 0x4c7   :  { %v1608_v10 = vld [vmem:[%s2769_s7 + $0x50] sm:$0xff] }
 0x4c8   :  { %v1036_v48 = vmul.f32 %v1035_v14, %v1028_v26  ;;  %v1609_v14 = vld [vmem:[%s2769_s7 + $0x48] sm:$0xff] }
 0x4ca   :  { %v1038_v50 = vsel %vm1037_vm12, %v1028_v26, %v1036_v48  ;;  %v1603_v26 = vld [vmem:[%s2769_s7 + $0x78] sm:$0xff] }
 0x4cb   :  { %v1041_v20 = vsel %vm1039_vm13, %v1040_v17, %v1038_v50  ;;  %v2930_v48 = vld [vmem:[#allocation42_spill] sm:$0xff]  ;;  %v2931_v17 = vld [vmem:[#allocation43_spill] sm:$0xff]  ;;  %v2932_v50 = vld [vmem:[#allocation44_spill] sm:$0xff] }
 0x4cc   :  { %v1042_v22 = vmul.f32 %v2929_v51, %v1041_v20  ;;  %v2933_v20 = vld [vmem:[#allocation45_spill] sm:$0xff] }
 0x4ce   :  { %v1043_v53 = vadd.f32 1e-08, %v1042_v22  ;;  %v2934_v22 = vld [vmem:[#allocation46_spill] sm:$0xff] }
 0x4d0   :  { %1536 = vrcp.f32 %v1043_v53  ;;  %v1055_v61 = vand.u32 2147483648, %v1043_v53  ;;  %v1053_v3 = vand.u32 2147483647, %v1043_v53  ;;  %vm1049_vm15 = vweird.f32 %v1043_v53 }
 0x4d1   :  { %1538 = vrcp.f32 %v1087_v7 }
 0x4d2   :  { %v1056_v11 = vor.u32 1.1754944e-38, %v1055_v61  ;;  %vm1054_vm2 = vcmp.eq.f32.partialorder %v1053_v3, 8.507059e+37 }
 0x4d6   :  { %v1537_v33 = vpop.eup %1536 }
 0x4d7   :  { %v1045_v46 = vmul.f32 %v1537_v33, %v1043_v53  ;;  %vm1050_vm14 = vweird.f32 %v1537_v33  ;;  %v1539_v37 = vpop.eup %1538  ;;  %v2935_v53 = vld [vmem:[#allocation47_spill] sm:$0xff] }
 0x4d8   :  { %vm1051_vm0 = vmor %vm1049_vm15, %vm1050_vm14  ;;  %v1091_v56 = vmul.f32 %v1539_v37, %v2630_v42  ;;  %v1594_v42 = vld [vmem:[#allocation2 + $0x180] sm:$0xff] }
 0x4d9   :  { %v1046_v59 = vsub.f32 1.0, %v1045_v46  ;;  %v2937_v46 = vld [vmem:[#allocation49_spill] sm:$0xff] }
 0x4db   :  { %v1047_v1 = vmul.f32 %v1537_v33, %v1046_v59  ;;  %v2938_v59 = vld [vmem:[#allocation51_spill] sm:$0xff] }
 0x4dd   :  { %v1048_v4 = vadd.f32 %v1537_v33, %v1047_v1 }
 0x4df   :  { %v1052_v15 = vsel %vm1051_vm0, %v1537_v33, %v1048_v4  ;;  %v2936_v33 = vld [vmem:[#allocation48_spill] sm:$0xff] }
 0x4e0   :  { %v1057_v16 = vsel %vm1054_vm2, %v1056_v11, %v1052_v15 }
 0x4e1   :  { %v1058_v24 = vmul.f32 %v1057_v16, %v1025_v12 }
 0x4e3   :  { %v1059_v32 = vsub.f32 0.0, %v1058_v24 }
 0x4e5   :  { %1540 = vtanh.f32 %v1059_v32 }
 0x4eb   :  { %v2659_v60 = vpop.eup %1540 }
 0x4ec   :  { %v1092_v57 = vadd.f32 %v2659_v60, %v1091_v56 }
 0x4ee   :  { %1506 = vmatmul.msk.f32.vlgmr.msra.gmra.mxu3 %vm707_vm1, %v1092_v57 }
 0x4ef   :  { %1245 = vmatpush.msra.mxu3 %v1587_v55  ;;  %v1610_v55 = vld [vmem:[%s2769_s7 + $0xf8] sm:$0xff] }
 0x4f1   :  { %1246 = vmatpush.msra.mxu3 %v1588_v52  ;;  %v2939_v52 = vld [vmem:[#allocation56_spill] sm:$0xff] }
 0x4f3   :  { %1247 = vmatpush.msra.mxu3 %v1589_v38  ;;  %v1611_v38 = vld [vmem:[%s2769_s7 + $0xf0] sm:$0xff] }
 0x4f5   :  { %1248 = vmatpush.msra.mxu3 %v1590_v40  ;;  %v2940_v40 = vld [vmem:[#allocation57_spill] sm:$0xff] }
 0x4f7   :  { %1249 = vmatpush.msra.mxu3 %v1591_v43  ;;  %v2941_v43 = vld [vmem:[#allocation59_spill] sm:$0xff] }
 0x4f9   :  { %1250 = vmatpush.msra.mxu3 %v1592_v44  ;;  %v1612_v44 = vld [vmem:[%s2769_s7 + $0xe8] sm:$0xff] }
 0x4fb   :  { %1251 = vmatpush.msra.mxu3 %v1593_v47  ;;  %v1613_v47 = vld [vmem:[%s2769_s7 + $0xe0] sm:$0xff] }
 0x4fd   :  { %1252 = vmatpush.msra.mxu3 %v1594_v42  ;;  %v1615_v42 = vld [vmem:[%s2769_s7 + $0xd0] sm:$0xff] }
 0x4ff   :  { %1253 = vmatpush.msra.mxu3 %v1595_v19  ;;  %v1616_v19 = vld [vmem:[%s2769_s7 + $0xc8] sm:$0xff] }
 0x501   :  { %1254 = vmatpush.msra.mxu3 %v1596_v23  ;;  %v1617_v23 = vld [vmem:[%s2769_s7 + $0xc0] sm:$0xff] }
 0x503   :  { %1255 = vmatpush.msra.mxu3 %v1597_v27  ;;  %v1618_v27 = vld [vmem:[%s2769_s7 + $0xb8] sm:$0xff] }
 0x505   :  { %1256 = vmatpush.msra.mxu3 %v1598_v29  ;;  %v1619_v29 = vld [vmem:[%s2769_s7 + $0xb0] sm:$0xff] }
 0x507   :  { %1257 = vmatpush.msra.mxu3 %v1599_v31  ;;  %v1620_v31 = vld [vmem:[%s2769_s7 + $0xa8] sm:$0xff] }
 0x509   :  { %1258 = vmatpush.msra.mxu3 %v1600_v35  ;;  %v2942_v35 = vld [vmem:[#allocation50_spill] sm:$0xff] }
 0x50b   :  { %1259 = vmatpush.msra.mxu3 %v1601_v39  ;;  %v2943_v39 = vld [vmem:[#allocation52_spill] sm:$0xff] }
 0x50d   :  { %1260 = vmatpush.msra.mxu3 %v1602_v18  ;;  %v2944_v18 = vld [vmem:[#allocation53_spill] sm:$0xff] }
 0x571   :  { %v1113_v36 = vpop.f32.mrf.mxu3 }
 0x572   :  { %v1116_v58 = vmul.f32 %v1113_v36, %v1113_v36 }
 0x574   :  { %1507 = vmatmul.msk.f32.vlgmr.msrb.gmra.mxu2 %vm767_vm8, %v1116_v58  ;;  %v2946_v58 = vld [vmem:[#allocation55_spill] sm:$0xff] }
 0x575   :  { %1309 = vmatpush.msrb.mxu2 %v1603_v26 }
 0x577   :  { %1310 = vmatpush.msrb.mxu2 %v1604_v0 }
 0x579   :  { %1311 = vmatpush.msrb.mxu2 %v1605_v13 }
 0x57b   :  { %1312 = vmatpush.msrb.mxu2 %v1606_v30 }
 0x57d   :  { %1313 = vmatpush.msrb.mxu2 %v1607_v62 }
 0x57f   :  { %1314 = vmatpush.msrb.mxu2 %v1608_v10 }
 0x581   :  { %1315 = vmatpush.msrb.mxu2 %v1609_v14 }
 0x583   :  { %1316 = vmatpush.msrb.mxu2 %v2930_v48 }
 0x585   :  { %1317 = vmatpush.msrb.mxu2 %v2931_v17 }
 0x587   :  { %1318 = vmatpush.msrb.mxu2 %v2932_v50 }
 0x589   :  { %1319 = vmatpush.msrb.mxu2 %v2933_v20 }
 0x58b   :  { %1320 = vmatpush.msrb.mxu2 %v2934_v22 }
 0x58d   :  { %1321 = vmatpush.msrb.mxu2 %v2935_v53 }
 0x58f   :  { %1322 = vmatpush.msrb.mxu2 %v2936_v33 }
 0x591   :  { %1323 = vmatpush.msrb.mxu2 %v2937_v46 }
 0x593   :  { %1324 = vmatpush.msrb.mxu2 %v2938_v59 }
 0x5f7   :  { %v1137_v61 = vpop.f32.mrf.mxu2 }
 0x5f8   :  { %v1144_v1 = vadd.f32 1e-08, %v1137_v61  ;;  %v1141_v3 = vadd.f32 1.0, %v1137_v61  ;;  %v1140_v24 = vmul.f32 %v1137_v61, %v1113_v36  ;;  %v2945_v36 = vld [vmem:[#allocation54_spill] sm:$0xff] }
 0x5fa   :  { %1542 = vrsqrt.f32 %v1144_v1  ;;  %vm1151_vm4 = vweird.f32 %v1144_v1 }
 0x5fb   :  { %1544 = vrcp.f32 %v1141_v3 }
 0x600   :  { %v1543_v4 = vpop.eup %1542 }
 0x601   :  { %v1146_v7 = vmul.f32 %v1543_v4, %v1144_v1  ;;  %v1545_v15 = vpop.eup %1544  ;;  %vm1152_vm3 = vweird.f32 %v1543_v4 }
 0x602   :  { %v1143_v37 = vmul.f32 %v1545_v15, %v1140_v24  ;;  %vm1153_vm5 = vmor %vm1151_vm4, %vm1152_vm3 }
 0x603   :  { %v1147_v11 = vmul.f32 %v1543_v4, %v1146_v7 }
 0x605   :  { %v1148_v12 = vmul.f32 0.5, %v1147_v11 }
 0x607   :  { %v1149_v16 = vsub.f32 1.5, %v1148_v12 }
 0x609   :  { %v1150_v32 = vmul.f32 %v1543_v4, %v1149_v16 }
 0x60b   :  { %v1154_v56 = vsel %vm1153_vm5, %v1543_v4, %v1150_v32 }
 0x60c   :  { %v1155_v57 = vmul.f32 %v1154_v56, %v1143_v37 }
 0x60e   :  { %1508 = vmatmul.msk.f32.vlgmr.msrb.gmra.mxu3 %vm767_vm8, %v1155_v57  ;;  %1509 = vmatmul.msk.f32.vlgmr.msra.gmra.mxu0 %vm767_vm8, %v1155_v57 }
 0x60f   :  { %1510 = vmatmul.msk.f32.vlgmr.msra.gmra.mxu1 %vm767_vm8, %v1155_v57  ;;  %1332 = vmatpush.msrb.mxu3 %v1610_v55 }
 0x610   :  { %1409 = vmatpush.msra.mxu0 %v2939_v52  ;;  %1435 = vmatpush.msra.mxu1 %v2331_v49  ;;  %v1614_v49 = vld [vmem:[%s2769_s7 + $0xd8] sm:$0xff]  ;;  %s1677_s7 = smov [#allocation5]  }
 0x611   :  { %1333 = vmatpush.msrb.mxu3 %v1611_v38  ;;  %s1487_s20 = sshll.u32 %s1677_s7, 4  ;;  %s1488_s20 = int_to_ptr.vmem [resolvable:$true] %s1487_s20 }
 0x612   :  { %1410 = vmatpush.msra.mxu0 %v2940_v40  ;;  %1436 = vmatpush.msra.mxu1 %v2941_v43 }
 0x613   :  { %1334 = vmatpush.msrb.mxu3 %v1612_v44 }
 0x615   :  { %1335 = vmatpush.msrb.mxu3 %v1613_v47 }
 0x617   :  { %1336 = vmatpush.msrb.mxu3 %v1614_v49 }
 0x619   :  { %1337 = vmatpush.msrb.mxu3 %v1615_v42 }
 0x61b   :  { %1338 = vmatpush.msrb.mxu3 %v1616_v19 }
 0x61d   :  { %1339 = vmatpush.msrb.mxu3 %v1617_v23 }
 0x61f   :  { %1340 = vmatpush.msrb.mxu3 %v1618_v27 }
 0x621   :  { %1341 = vmatpush.msrb.mxu3 %v1619_v29 }
 0x623   :  { %1342 = vmatpush.msrb.mxu3 %v1620_v31 }
 0x625   :  { %1343 = vmatpush.msrb.mxu3 %v2942_v35 }
 0x627   :  { %1344 = vmatpush.msrb.mxu3 %v2943_v39 }
 0x629   :  { %1345 = vmatpush.msrb.mxu3 %v2944_v18 }
 0x62b   :  { %1346 = vmatpush.msrb.mxu3 %v2945_v36 }
 0x62d   :  { %1347 = vmatpush.msrb.mxu3 %v2946_v58 }
 0x68b   :  { %v1198_v26 = vpop.f32.mrf.mxu0 }
 0x68c   :  { %v1221_v0 = vadd.f32 %v1198_v26, %v2586_v45  ;;  %v1218_v13 = vpop.f32.mrf.mxu1 }
 0x68d   :  { %v1222_v30 = vadd.f32 %v1218_v13, %v2599_v28 }
 0x68e   :  { %v1223_v62 = vmul.f32 0.5, %v1221_v0 }
 0x68f   :  { %v1224_v10 = vmul.f32 0.5, %v1222_v30 }
 0x690   :  { %1241 = vmatmul.f32.vlgmr.msra.gmra.mxu2 %v1223_v62  ;;  %1281 = vmatmul.f32.vlgmr.msrb.gmra.mxu0 %v1223_v62 }
 0x691   :  { %1261 = vmatmul.f32.vlgmr.msra.gmra.mxu3 %v1224_v10  ;;  %1301 = vmatmul.f32.vlgmr.msrb.gmra.mxu1 %v1224_v10  ;;  %v1176_v14 = vpop.f32.mrf.mxu3 }
 0x692   :  { %v1179_v48 = vmul.f32 %v2659_v60, %v1176_v14  ;;  %1453 = vmatpush.msrb.mxu0 %v2344_v54 }
 0x694   :  { %v1180_v17 = vadd.f32 %v1179_v48, %v2583_v5  ;;  %1454 = vmatpush.msrb.mxu0 %v2349_v9 }
 0x696   :  { %v1386_v45 = vsel %vm707_vm1, %v1180_v17, -inf  ;;  %1455 = vmatpush.msrb.mxu0 %v2355_v2 }
 0x697   :  { %1387 = vmax.xlane.f32.xlu0 %v1386_v45 }
 0x698   :  { %1456 = vmatpush.msrb.mxu0 %v2361_v21 }
 0x69a   :  { %1457 = vmatpush.msrb.mxu0 %v2367_v25 }
 0x69c   :  { %1458 = vmatpush.msrb.mxu0 %v2373_v41 }
 0x69e   :  { %1459 = vmatpush.msrb.mxu0 %v2384_v34 }
 0x6a0   :  { %1460 = vmatpush.msrb.mxu0 %v2390_v6 }
 0x70a   :  { %v1388_v54 = vpop.xlane.xlu0 %1387 }
 0x70b   :  { %v1389_v28 = vsub.f32 %v1180_v17, %v1388_v54 }
 0x70d   :  { %v1390_v5 = vmul.f32 1.442695, %v1389_v28  ;;  %v1282_v60 = vpop.f32.mrf.mxu0 }
 0x70e   :  { %v1302_v9 = vpop.f32.mrf.mxu1 }
 0x70f   :  { %1546 = vpow2.f32 %v1390_v5  ;;  %v1303_v50 = vadd.f32 %v1302_v9, %v1282_v60 }
 0x711   :  { %v1306_v2 = vmul.f32 %v1303_v50, %v2285_v8  ;;  %v1308_v34 = vmul.f32 %v1303_v50, %v1303_v50 }
 0x713   :  { %1348 = vmatmul.f32.vlgmr.msrb.gmra.mxu3 %v1306_v2  ;;  %v1242_v20 = vpop.f32.mrf.mxu2 }
 0x714   :  { %v1262_v21 = vpop.f32.mrf.mxu3 }
 0x715   :  { %v1547_v22 = vpop.eup %1546  ;;  %v1263_v25 = vadd.f32 %v1262_v21, %v1242_v20 }
 0x716   :  { %1511 = vmatmul.msk.f32.vlgmr.msra.gmra.mxu0 %vm707_vm1, %v1547_v22 }
 0x717   :  { %v1305_v41 = vmul.f32 %v1263_v25, %v2276_v63  ;;  %v1307_v6 = vmul.f32 %v1263_v25, %v1263_v25 }
 0x719   :  { %1325 = vmatmul.f32.vlgmr.msrb.gmra.mxu2 %v1305_v41 }
 0x71b   :  { %1351 = vmatmul.f32.gmra.mxu3 %v1308_v34 }
 0x721   :  { %1328 = vmatmul.f32.gmra.mxu2 %v1307_v6 }
 0x793   :  { %v1412_v43 = vpop.f32.mrf.mxu0 }
 0x796   :  { %v1349_v53 = vpop.f32.mrf.mxu3 }
 0x79c   :  { %v1326_v33 = vpop.f32.mrf.mxu2 }
 0x79d   :  { %v1350_v47 = vadd.f32 %v1349_v53, %v1326_v33 }
 0x79e   :  { %v1352_v46 = vpop.f32.mrf.mxu3 }
 0x7a4   :  { %v1329_v59 = vpop.f32.mrf.mxu2 }
 0x7a5   :  { %v1353_v61 = vadd.f32 %v1352_v46, %v1329_v59 }
 0x7a7   :  { %1548 = vrsqrt.f32 %v1353_v61  ;;  %vm1362_vm6 = vcmp.eq.f32.partialorder %v1353_v61, inf  ;;  %v1365_v63 = vand.u32 2147483648, %v1353_v61  ;;  %vm1364_vm7 = vcmp.eq.f32.partialorder %v1353_v61, 0.0 }
 0x7ad   :  { %v1549_v8 = vpop.eup %1548 }
 0x7ae   :  { %v1356_v1 = vmul.f32 %v1549_v8, %v1353_v61 }
 0x7b0   :  { %v1357_v3 = vmul.f32 %v1549_v8, %v1356_v1 }
 0x7b2   :  { %v1358_v4 = vmul.f32 0.5, %v1357_v3 }
 0x7b4   :  { %v1359_v7 = vsub.f32 1.5, %v1358_v4 }
 0x7b6   :  { %v1360_v11 = vmul.f32 %v1549_v8, %v1359_v7 }
 0x7b8   :  { %v1361_v12 = vmul.f32 %v1360_v11, %v1353_v61 }
 0x7ba   :  { %v1363_v15 = vsel %vm1362_vm6, %v1353_v61, %v1361_v12 }
 0x7bb   :  { %v1366_v16 = vsel %vm1364_vm7, %v1365_v63, %v1363_v15 }
 0x7bc   :  { %v1367_v24 = vmul.f32 %v2929_v51, %v1366_v16 }
 0x7be   :  { %v1368_v32 = vadd.f32 1e-08, %v1367_v24 }
 0x7c0   :  { %1550 = vrcp.f32 %v1368_v32  ;;  %v1380_v55 = vand.u32 2147483648, %v1368_v32  ;;  %v1378_v38 = vand.u32 2147483647, %v1368_v32  ;;  %vm1374_vm10 = vweird.f32 %v1368_v32 }
 0x7c1   :  { %1552 = vrcp.f32 %v1412_v43 }
 0x7c2   :  { %v1381_v44 = vor.u32 1.1754944e-38, %v1380_v55  ;;  %vm1379_vm12 = vcmp.eq.f32.partialorder %v1378_v38, 8.507059e+37 }
 0x7c6   :  { %v1551_v37 = vpop.eup %1550 }
 0x7c7   :  { %v1370_v56 = vmul.f32 %v1551_v37, %v1368_v32  ;;  %vm1375_vm9 = vweird.f32 %v1551_v37  ;;  %v1553_v23 = vpop.eup %1552 }
 0x7c8   :  { %vm1376_vm11 = vmor %vm1374_vm10, %vm1375_vm9  ;;  %v1416_v27 = vmul.f32 %v1553_v23, %v1547_v22 }
 0x7c9   :  { %v1371_v57 = vsub.f32 1.0, %v1370_v56 }
 0x7cb   :  { %v1372_v52 = vmul.f32 %v1551_v37, %v1371_v57 }
 0x7cd   :  { %v1373_v40 = vadd.f32 %v1551_v37, %v1372_v52 }
 0x7cf   :  { %v1377_v49 = vsel %vm1376_vm11, %v1551_v37, %v1373_v40 }
 0x7d0   :  { %v1382_v42 = vsel %vm1379_vm12, %v1381_v44, %v1377_v49 }
 0x7d1   :  { %v1383_v51 = vmul.f32 %v1382_v42, %v1350_v47 }
 0x7d3   :  { %v1384_v19 = vsub.f32 0.0, %v1383_v51 }
 0x7d5   :  { %1554 = vtanh.f32 %v1384_v19 }
 0x7db   :  { %v1555_v29 = vpop.eup %1554 }
 0x7dc   :  { %v1417_v31 = vadd.f32 %v1555_v29, %v1416_v27 }
 0x7de   :  { %1512 = vmatmul.msk.f32.vlgmr.msra.gmra.mxu1 %vm707_vm1, %v1417_v31 }
 0x85b   :  { %v1438_v35 = vpop.f32.mrf.mxu1 }
 0x85c   :  { %v1441_v39 = vmul.f32 %v1438_v35, %v1438_v35 }
 0x85e   :  { %1513 = vmatmul.msk.f32.vlgmr.msrb.gmra.mxu0 %vm767_vm8, %v1441_v39 }
 0x8db   :  { %v1462_v18 = vpop.f32.mrf.mxu0 }
 0x8dc   :  { %v1469_v36 = vadd.f32 1e-08, %v1462_v18  ;;  %v1466_v58 = vadd.f32 1.0, %v1462_v18  ;;  %v1465_v14 = vmul.f32 %v1462_v18, %v1438_v35 }
 0x8de   :  { %1556 = vrsqrt.f32 %v1469_v36  ;;  %vm1476_vm14 = vweird.f32 %v1469_v36 }
 0x8df   :  { %1558 = vrcp.f32 %v1466_v58 }
 0x8e4   :  { %v1557_v26 = vpop.eup %1556 }
 0x8e5   :  { %v1471_v0 = vmul.f32 %v1557_v26, %v1469_v36  ;;  %v1559_v62 = vpop.eup %1558  ;;  %vm1477_vm13 = vweird.f32 %v1557_v26 }
 0x8e6   :  { %v1468_v17 = vmul.f32 %v1559_v62, %v1465_v14  ;;  %vm1478_vm1 = vmor %vm1476_vm14, %vm1477_vm13 }
 0x8e7   :  { %v1472_v13 = vmul.f32 %v1557_v26, %v1471_v0 }
 0x8e9   :  { %v1473_v30 = vmul.f32 0.5, %v1472_v13 }
 0x8eb   :  { %v1474_v10 = vsub.f32 1.5, %v1473_v30 }
 0x8ed   :  { %v1475_v48 = vmul.f32 %v1557_v26, %v1474_v10 }
 0x8ef   :  { %v1479_v45 = vsel %vm1478_vm1, %v1557_v26, %v1475_v48 }
 0x8f0   :  { %v1480_v54 = vmul.f32 %v1479_v45, %v1468_v17 }
 0x8f2   :  { %1481 = vst.msk [vmem:[#allocation5] sm:$0xff] %vm767_vm8, %v1480_v54 }
 0x8f3   :  { %1492 = dma.vmem_to_hbm [thread:$0]  %s1488_s20, 128, %s1490_s8, [#allocation4]  }
 0x8f4   :  { %1671 = dma.done.wait [#allocation4], 128  }
 0x8f5   :  { %1672 = vsyncadd [#allocation4], 4294967168 }
 0x8f6   :  { %1497 = vsyncpa [#allocation3], 1 }
 0x8f7   :  { %1498 = vsyncpa [#allocation4], 1 }

</bundles_post_ra>
